<compile_context>
chip_gen: v5e
topology: v5e:2x2
jax: 0.10.0
libtpu: 0.0.40
codegen_flags: <defaults>
</compile_context>

<pallas_src>
import math
from functools import partial

import numpy as np
import jax
import jax.numpy as jnp
from jax import lax
from jax.experimental import pallas as pl
from jax.experimental.pallas import tpu as pltpu

D_MODEL = 66
N_HEAD = 2
HEAD_DIM = D_MODEL // N_HEAD      # 33
D_FF = D_MODEL * 4                # 264

# lane-friendly padded sizes
D_PAD = 128                       # d_model 66 -> 128
HEAD_PAD = 64                     # head_dim 33 -> 64 (two heads pack one vreg)
FF_PAD = 384                      # d_ff 264 -> 384 (multiple of 128)

LN_EPS = 1e-5
NEG_INF = -1e30


def _round_up(x, m):
    return (x + m - 1) // m * m


# ----------------------------------------------------------------------------
# Pallas kernel: one grid step == TB groups == NB packed attention blocks of
# width W = G * NP query/key rows.
# ----------------------------------------------------------------------------
def _transformer_agg_kernel(
    x_ref,      # (TB, NP, D_PAD)  f32  dense, time-sorted edge features (padded)
    mq_ref,     # (TB, NP, 1)      f32  row-validity mask
    kb_ref,     # (NB, 1, W)       f32  additive key-padding bias (0 / -1e30)
    pe_ref,     # (NP, D_PAD)      f32  positional-encoding table
    bdiag_ref,  # (W, W)           f32  additive block-diagonal group bias
    wqkv_ref,   # (D_PAD, 3*D_PAD) bf16 fused QKV weights (per-head cols 33->64)
    wo_ref,     # (D_PAD, D_PAD)   bf16 fused (head0 + head1) out-projection
    w1_ref,     # (D_PAD, FF_PAD)  bf16
    w2_ref,     # (FF_PAD, D_PAD)  bf16
    vec_ref,    # (8, FF_PAD)      f32  packed biases / LayerNorm params
    out_ref,    # (TB, D_PAD)      f32  lane-dense per-group output
    *, pack_g, inv_n, scale,
):
    f32, bf16 = jnp.float32, jnp.bfloat16
    tb, np_, dp = x_ref.shape
    g = pack_g
    nb = tb // g
    w = g * np_
    m = tb * np_

    bqkv  = vec_ref[0:1, :]                  # (1, 384)
    bff1  = vec_ref[1:2, :]                  # (1, 384)
    bo    = vec_ref[2:3, 0:D_PAD]            # (1, 128)
    g1    = vec_ref[3:4, 0:D_PAD]
    beta1 = vec_ref[4:5, 0:D_PAD]
    bff2  = vec_ref[5:6, 0:D_PAD]
    g2    = vec_ref[6:7, 0:D_PAD]
    beta2 = vec_ref[7:8, 0:D_PAD]

    # positional encoding (dropout = identity in eval mode); fold batch*seq
    # into the matmul M dimension.  Residual / LayerNorm path stays f32.
    x2 = (x_ref[...] + pe_ref[...]).reshape(m, dp)            # (M, 128) f32

    # --- fused QKV projection: bf16 operands on the MXU, f32 accumulation ---
    qkv = jnp.dot(x2.astype(bf16), wqkv_ref[...],
                  preferred_element_type=f32) + bqkv          # (M, 384) f32
    qkv3 = qkv.reshape(nb, w, 3 * dp)        # pack G groups per attention block
    q = qkv3[:, :, 0 * dp:1 * dp] * scale                     # f32
    k = qkv3[:, :, 1 * dp:2 * dp].astype(bf16)
    v = qkv3[:, :, 2 * dp:3 * dp].astype(bf16)

    # additive attention bias (block-diagonal group mask + key padding),
    # computed once and reused by both heads
    bias = bdiag_ref[...][None, :, :] + kb_ref[...]           # (NB, W, W) f32

    lane = lax.broadcasted_iota(jnp.int32, (1, 1, dp), 2)
    hv_heads = []
    for h in range(N_HEAD):
        # select this head's 64 lanes of q with a cheap VPU mask
        hmask = jnp.logical_and(lane >= h * HEAD_PAD, lane < (h + 1) * HEAD_PAD)
        qh = jnp.where(hmask, q, 0.0).astype(bf16)
        # dense (W,128)@(128,W) scores per packed block; cross-group and
        # padded-key entries get -1e30 and exp to exactly 0
        s = jnp.einsum('bnd,bmd->bnm', qh, k,
                       preferred_element_type=f32) + bias
        s = s - jnp.max(s, axis=-1, keepdims=True)
        p = jnp.exp(s)
        p = p * pl.reciprocal(jnp.sum(p, axis=-1, keepdims=True), approx=True)
        hv_heads.append(jnp.einsum('bnm,bmd->bnd', p.astype(bf16), v,
                                   preferred_element_type=f32))   # (NB, W, 128)

    # merge the two heads with a lane select and run ONE fused out-projection
    hv = jnp.where(lane < HEAD_PAD, hv_heads[0], hv_heads[1])     # (NB, W, 128)
    attn = jnp.dot(hv.reshape(m, dp).astype(bf16), wo_ref[...],
                   preferred_element_type=f32) + bo               # (M, 128) f32

    lane2 = lax.broadcasted_iota(jnp.int32, (1, dp), 1)
    feat_valid = (lane2 < D_MODEL).astype(f32)   # 66 real lanes
    inv_d = 1.0 / D_MODEL

    def layer_norm(t, gam, bet):
        # padded lanes of t are exactly zero -> plain sum / 66 is the true mean
        mu = jnp.sum(t, axis=-1, keepdims=True) * inv_d
        diff = (t - mu) * feat_valid
        var = jnp.sum(diff * diff, axis=-1, keepdims=True) * inv_d
        return diff * lax.rsqrt(var + LN_EPS) * gam + bet    # padded lanes stay 0

    # --- residual + LayerNorm1 (post-norm) ---
    y = layer_norm(x2 + attn, g1, beta1)

    # --- feed-forward (ReLU) + residual + LayerNorm2 (slab matmuls, bf16) ---
    h1 = jnp.dot(y.astype(bf16), w1_ref[...], preferred_element_type=f32) + bff1
    h1 = jnp.maximum(h1, 0.0)
    h2 = jnp.dot(h1.astype(bf16), w2_ref[...], preferred_element_type=f32) + bff2
    z = layer_norm(y + h2, g2, beta2)

    # --- zero padded rows, mean over the (unpadded) sequence length ---
    z3 = z.reshape(tb, np_, dp) * mq_ref[...]
    out_ref[...] = jnp.sum(z3, axis=1) * inv_n               # lane-dense (TB, 128)


# ----------------------------------------------------------------------------
# Wrapper: adaptive tiling, weight repacking, BlockSpecs / grid.
# ----------------------------------------------------------------------------
def transformer_agg_pallas(feats, mask, pe, params, *,
                           max_slab_rows=1024, pack_target=256):
    B, N, D = feats.shape
    assert D == D_MODEL and N_HEAD == 2
    f32, bf16 = jnp.float32, jnp.bfloat16

    # ---------------- tiling ----------------
    NP = _round_up(N, 8)                       # pad sequence to a sublane multiple
    B8 = _round_up(B, 8)
    # groups per grid step: multiple of 8, slab-row cap (VMEM: safe under the
    # 16 MiB v5e / 32 MiB v7x scoped defaults), and <= ceil(B/2) so v7x's
    # second TensorCore gets work when there are enough groups.
    tb_cap = max(8, min(256, (max_slab_rows // NP) // 8 * 8))
    tb_two = B8 if B8 < 16 else _round_up(-(-B8 // 2), 8)
    TB = max(8, min(B8, tb_cap, tb_two))
    B_pad = _round_up(B, TB)

    # groups packed per attention block: largest divisor of TB with G*NP <= 256
    G = 1
    for cand in range(1, TB + 1):
        if TB % cand == 0 and cand * NP <= pack_target:
            G = cand
    W = G * NP
    NB = TB // G

    # ---------------- activations ----------------
    x = jnp.zeros((B_pad, NP, D_PAD), f32).at[:B, :N, :D].set(feats)
    msk = jnp.zeros((B_pad, NP), f32).at[:B, :N].set(mask)
    mq = msk[:, :, None]                                        # (B_pad, NP, 1)
    # packed additive key-padding bias, layout matches the in-kernel packing
    kbias = jnp.where(msk > 0.5, 0.0, NEG_INF).reshape(B_pad // G, 1, W)
    pe_pad = jnp.zeros((NP, D_PAD), f32).at[:N, :D].set(pe[:N])

    # static block-diagonal group bias (0 inside a group, -1e30 across groups)
    gid = np.arange(W, dtype=np.int64) // NP
    bdiag = jnp.asarray(np.where(gid[:, None] == gid[None, :], 0.0, NEG_INF),
                        dtype=f32)                              # (W, W)

    # ---------------- weight repacking (plain-JAX glue) ----------------
    wqkv, bqkv_flat = params["wqkv"], params["bqkv"][0]         # (66,198), (198,)

    def pad_head_cols(wcol):       # (66, 66) -> (66, 128), per-head 33 -> 64
        h0, h1 = wcol[:, :HEAD_DIM], wcol[:, HEAD_DIM:]
        z = jnp.zeros((D_MODEL, HEAD_PAD - HEAD_DIM), f32)
        return jnp.concatenate([h0, z, h1, z], axis=1)

    def pad_head_vec(b):           # (66,) -> (128,)
        h0, h1 = b[:HEAD_DIM], b[HEAD_DIM:]
        z = jnp.zeros((HEAD_PAD - HEAD_DIM,), f32)
        return jnp.concatenate([h0, z, h1, z])

    wq_p = pad_head_cols(wqkv[:, 0 * D:1 * D])
    wk_p = pad_head_cols(wqkv[:, 1 * D:2 * D])
    wv_p = pad_head_cols(wqkv[:, 2 * D:3 * D])
    wqkv_pad = jnp.zeros((D_PAD, 3 * D_PAD), f32).at[:D, :].set(
        jnp.concatenate([wq_p, wk_p, wv_p], axis=1)).astype(bf16)   # (128, 384)

    bqkv_pad = jnp.concatenate([pad_head_vec(bqkv_flat[0 * D:1 * D]),
                                pad_head_vec(bqkv_flat[1 * D:2 * D]),
                                pad_head_vec(bqkv_flat[2 * D:3 * D])])  # (384,)

    # fused out-projection: head0 rows at 0:33, head1 rows at 64:97, rest zero
    wo = params["wo"]
    wo_pad = (jnp.zeros((D_PAD, D_PAD), f32)
              .at[0:HEAD_DIM, :D].set(wo[:HEAD_DIM])
              .at[HEAD_PAD:HEAD_PAD + HEAD_DIM, :D].set(wo[HEAD_DIM:])
              ).astype(bf16)                                        # (128, 128)

    w1_pad = jnp.zeros((D_PAD, FF_PAD), f32).at[:D, :D_FF].set(
        params["w1"]).astype(bf16)
    w2_pad = jnp.zeros((FF_PAD, D_PAD), f32).at[:D_FF, :D].set(
        params["w2"]).astype(bf16)

    def pad_vec(v, width=FF_PAD):
        v = v.reshape(-1)
        return jnp.zeros((width,), f32).at[:v.shape[0]].set(v)

    vecs = jnp.stack([
        bqkv_pad,
        pad_vec(params["bff1"]),
        pad_vec(params["bo"]),
        pad_vec(params["g1"]),
        pad_vec(params["beta1"]),
        pad_vec(params["bff2"]),
        pad_vec(params["g2"]),
        pad_vec(params["beta2"]),
    ])                                                              # (8, 384)

    kernel = partial(_transformer_agg_kernel,
                     pack_g=G, inv_n=1.0 / N, scale=1.0 / math.sqrt(HEAD_DIM))

    def const_spec(shape):
        return pl.BlockSpec(shape, lambda b: (0,) * len(shape))

    grid_spec = pltpu.PrefetchScalarGridSpec(
        num_scalar_prefetch=0,
        grid=(B_pad // TB,),
        in_specs=[
            pl.BlockSpec((TB, NP, D_PAD), lambda b: (b, 0, 0)),   # x
            pl.BlockSpec((TB, NP, 1),     lambda b: (b, 0, 0)),   # row mask
            pl.BlockSpec((NB, 1, W),      lambda b: (b, 0, 0)),   # key bias (packed)
            const_spec((NP, D_PAD)),                              # pos. encoding
            const_spec((W, W)),                                   # block-diag bias
            const_spec((D_PAD, 3 * D_PAD)),                       # fused Wqkv (bf16)
            const_spec((D_PAD, D_PAD)),                           # fused Wo   (bf16)
            const_spec((D_PAD, FF_PAD)),                          # W1 (bf16)
            const_spec((FF_PAD, D_PAD)),                          # W2 (bf16)
            const_spec((8, FF_PAD)),                              # packed biases/LN
        ],
        out_specs=pl.BlockSpec((TB, D_PAD), lambda b: (b, 0)),    # lane-dense out
    )

    out = pl.pallas_call(
        kernel,
        out_shape=jax.ShapeDtypeStruct((B_pad, D_PAD), f32),
        grid_spec=grid_spec,
        compiler_params=pltpu.CompilerParams(
            dimension_semantics=("parallel",),
            vmem_limit_bytes=40 * 1024 * 1024,   # > v5e 16MiB default, < v7x 64MiB
        ),
    )(x, mq, kbias, pe_pad, bdiag, wqkv_pad, wo_pad, w1_pad, w2_pad, vecs)

    return out[:B, :D]           # (B, 66); torch .squeeze() is a no-op for B > 1


# ----------------------------------------------------------------------------
# Plain-JAX glue: preprocessing equivalent to to_dense_batch + sort_wrt_time.
# ----------------------------------------------------------------------------
def preprocess(x, index, timestamps, num_groups, max_nodes):
    x = jnp.concatenate([timestamps.reshape(-1, 1), x], axis=1)   # prepend time
    sort_ids = jnp.argsort(index)
    xs = x[sort_ids]
    idxs = index[sort_ids]
    E = x.shape[0]
    first = jnp.searchsorted(idxs, idxs, side="left")
    pos = jnp.arange(E) - first
    dense = jnp.zeros((num_groups, max_nodes, x.shape[1]), x.dtype).at[idxs, pos].set(xs)
    mask = jnp.zeros((num_groups, max_nodes), jnp.float32).at[idxs, pos].set(1.0)
    # sort each row by timestamp (padding rows carry timestamp 0.0, matching the
    # torch module's behaviour for positive timestamps)
    order = jnp.argsort(dense[:, :, 0], axis=1)
    dense = jnp.take_along_axis(dense, order[:, :, None], axis=1)
    mask = jnp.take_along_axis(mask, order, axis=1)
    return dense[:, :, 1:], mask          # drop timestamp column -> (B, N, 66)


def make_pe(max_len, d_model):
    position = np.arange(max_len, dtype=np.float32)[:, None]
    div_term = np.exp(np.arange(0, d_model, 2, dtype=np.float32)
                      * (-math.log(10000.0) / d_model))
    pe = np.zeros((max_len, d_model), np.float32)
    pe[:, 0::2] = np.sin(position * div_term)
    pe[:, 1::2] = np.cos(position * div_term)
    return jnp.asarray(pe)


def init_params(key):
    ks = jax.random.split(key, 8)

    def xavier(k, shape):
        a = math.sqrt(6.0 / (shape[0] + shape[1]))
        return jax.random.uniform(k, shape, jnp.float32, -a, a)

    def small(k, shape):
        return 0.02 * jax.random.normal(k, shape, jnp.float32)

    # math layout: y = x @ W + b  (W == torch Linear weight, transposed)
    return {
        "wqkv": xavier(ks[0], (D_MODEL, 3 * D_MODEL)),
        "bqkv": small(ks[1], (1, 3 * D_MODEL)),
        "wo": xavier(ks[2], (D_MODEL, D_MODEL)),
        "bo": small(ks[3], (1, D_MODEL)),
        "g1": jnp.ones((1, D_MODEL), jnp.float32),
        "beta1": jnp.zeros((1, D_MODEL), jnp.float32),
        "w1": xavier(ks[4], (D_MODEL, D_FF)),
        "bff1": small(ks[5], (1, D_FF)),
        "w2": xavier(ks[6], (D_FF, D_MODEL)),
        "bff2": small(ks[7], (1, D_MODEL)),
        "g2": jnp.ones((1, D_MODEL), jnp.float32),
        "beta2": jnp.zeros((1, D_MODEL), jnp.float32),
    }


# ----------------------------------------------------------------------------
# Pure-JAX f32 reference (same math as the torch module in eval mode).
# ----------------------------------------------------------------------------
def reference_forward(feats, mask, pe, P):
    B, N, D = feats.shape
    x = feats + pe[None, :N, :]
    qkv = x @ P["wqkv"] + P["bqkv"]
    q, k, v = jnp.split(qkv, 3, axis=-1)
    qh = q.reshape(B, N, N_HEAD, HEAD_DIM).transpose(0, 2, 1, 3)
    kh = k.reshape(B, N, N_HEAD, HEAD_DIM).transpose(0, 2, 1, 3)
    vh = v.reshape(B, N, N_HEAD, HEAD_DIM).transpose(0, 2, 1, 3)
    s = jnp.einsum("bhqd,bhkd->bhqk", qh, kh) / math.sqrt(HEAD_DIM)
    s = jnp.where(mask[:, None, None, :] > 0.5, s, NEG_INF)
    p = jax.nn.softmax(s, axis=-1)
    a = jnp.einsum("bhqk,bhkd->bhqd", p, vh).transpose(0, 2, 1, 3).reshape(B, N, D)
    a = a @ P["wo"] + P["bo"]

    def ln(t, g, b):
        mu = t.mean(-1, keepdims=True)
        var = ((t - mu) ** 2).mean(-1, keepdims=True)
        return (t - mu) / jnp.sqrt(var + LN_EPS) * g + b

    y = ln(x + a, P["g1"], P["beta1"])
    h = jnp.maximum(y @ P["w1"] + P["bff1"], 0.0) @ P["w2"] + P["bff2"]
    z = ln(y + h, P["g2"], P["beta2"])
    z = z * mask[:, :, None]
    return z.mean(axis=1)


if __name__ == "__main__":
    key = jax.random.PRNGKey(0)
    kx, kt, kp = jax.random.split(key, 3)

    # small deterministic example: 18 edges, 3 groups, max group size 7
    index_np = np.array([0, 1, 1, 2, 0, 1, 2, 2, 1, 0, 1, 2, 0, 1, 2, 1, 0, 2],
                        dtype=np.int32)
    num_groups = int(index_np.max()) + 1
    max_nodes = int(np.bincount(index_np).max())
    E = index_np.shape[0]

    x = jax.random.normal(kx, (E, D_MODEL), jnp.float32)
    timestamps = jax.random.uniform(kt, (E,), jnp.float32, minval=0.1, maxval=10.0)
    index = jnp.asarray(index_np)

    feats, mask = preprocess(x, index, timestamps, num_groups, max_nodes)
    pe = make_pe(128, D_MODEL)[:max_nodes]
    params = init_params(kp)

    out = transformer_agg_pallas(feats, mask, pe, params)
    out = jax.block_until_ready(out)

    # The kernel uses bf16 matmul operands (f32 accumulation) while the
    # reference runs pure f32, so the tolerance reflects bf16 rounding
    # (~2^-9 relative per operand) rather than the old 2e-3 f32 tolerance.
    ref = reference_forward(feats, mask, pe, params)
    np.testing.assert_allclose(np.asarray(out), np.asarray(ref),
                               rtol=2.5e-2, atol=2.5e-2)

    print("KERNEL_OK")
</pallas_src>

<mosaic_0001>
module attributes {stable_mosaic.version = 11 : i64} {
  func.func @_transformer_agg_kernel(%arg0: i32, %arg1: memref<8x8x128xf32, #tpu.memory_space<vmem>>, %arg2: memref<8x8x1xf32, #tpu.memory_space<vmem>>, %arg3: memref<1x1x64xf32, #tpu.memory_space<vmem>>, %arg4: memref<8x128xf32, #tpu.memory_space<vmem>>, %arg5: memref<64x64xf32, #tpu.memory_space<vmem>>, %arg6: memref<128x384xbf16, #tpu.memory_space<vmem>>, %arg7: memref<128x128xbf16, #tpu.memory_space<vmem>>, %arg8: memref<128x384xbf16, #tpu.memory_space<vmem>>, %arg9: memref<384x128xbf16, #tpu.memory_space<vmem>>, %arg10: memref<8x384xf32, #tpu.memory_space<vmem>>, %arg11: memref<8x128xf32, #tpu.memory_space<vmem>>) attributes {dimension_semantics = [#tpu.dimension_semantics<parallel>], iteration_bounds = array<i64: 1>, scalar_prefetch = 0 : i64, scratch_operands = 0 : i64, tpu.core_type = #tpu.core_type<tc>, window_params = [{transform_indices = @transform_0, window_bounds = array<i64: 8, 8, 128>}, {transform_indices = @transform_1, window_bounds = array<i64: 8, 8, 1>}, {transform_indices = @transform_2, window_bounds = array<i64: 1, 1, 64>}, {pipeline_mode = #tpu.pipeline_mode<synchronous>, transform_indices = @transform_3, window_bounds = array<i64: 8, 128>}, {pipeline_mode = #tpu.pipeline_mode<synchronous>, transform_indices = @transform_4, window_bounds = array<i64: 64, 64>}, {pipeline_mode = #tpu.pipeline_mode<synchronous>, transform_indices = @transform_5, window_bounds = array<i64: 128, 384>}, {pipeline_mode = #tpu.pipeline_mode<synchronous>, transform_indices = @transform_6, window_bounds = array<i64: 128, 128>}, {pipeline_mode = #tpu.pipeline_mode<synchronous>, transform_indices = @transform_7, window_bounds = array<i64: 128, 384>}, {pipeline_mode = #tpu.pipeline_mode<synchronous>, transform_indices = @transform_8, window_bounds = array<i64: 384, 128>}, {pipeline_mode = #tpu.pipeline_mode<synchronous>, transform_indices = @transform_9, window_bounds = array<i64: 8, 384>}, {transform_indices = @transform_10, window_bounds = array<i64: 8, 128>}]} {
    %c0 = arith.constant 0 : index
    %c0_0 = arith.constant 0 : index
    %0 = vector.load %arg10[%c0, %c0_0] : memref<8x384xf32, #tpu.memory_space<vmem>>, vector<1x384xf32>
    %c1 = arith.constant 1 : index
    %c0_1 = arith.constant 0 : index
    %1 = vector.load %arg10[%c1, %c0_1] : memref<8x384xf32, #tpu.memory_space<vmem>>, vector<1x384xf32>
    %c2 = arith.constant 2 : index
    %c0_2 = arith.constant 0 : index
    %2 = vector.load %arg10[%c2, %c0_2] : memref<8x384xf32, #tpu.memory_space<vmem>>, vector<1x128xf32>
    %c3 = arith.constant 3 : index
    %c0_3 = arith.constant 0 : index
    %3 = vector.load %arg10[%c3, %c0_3] : memref<8x384xf32, #tpu.memory_space<vmem>>, vector<1x128xf32>
    %c4 = arith.constant 4 : index
    %c0_4 = arith.constant 0 : index
    %4 = vector.load %arg10[%c4, %c0_4] : memref<8x384xf32, #tpu.memory_space<vmem>>, vector<1x128xf32>
    %c5 = arith.constant 5 : index
    %c0_5 = arith.constant 0 : index
    %5 = vector.load %arg10[%c5, %c0_5] : memref<8x384xf32, #tpu.memory_space<vmem>>, vector<1x128xf32>
    %c6 = arith.constant 6 : index
    %c0_6 = arith.constant 0 : index
    %6 = vector.load %arg10[%c6, %c0_6] : memref<8x384xf32, #tpu.memory_space<vmem>>, vector<1x128xf32>
    %c7 = arith.constant 7 : index
    %c0_7 = arith.constant 0 : index
    %7 = vector.load %arg10[%c7, %c0_7] : memref<8x384xf32, #tpu.memory_space<vmem>>, vector<1x128xf32>
    %c0_8 = arith.constant 0 : index
    %c0_9 = arith.constant 0 : index
    %c0_10 = arith.constant 0 : index
    %8 = vector.load %arg1[%c0_8, %c0_9, %c0_10] : memref<8x8x128xf32, #tpu.memory_space<vmem>>, vector<8x8x128xf32>
    %c0_11 = arith.constant 0 : index
    %c0_12 = arith.constant 0 : index
    %9 = vector.load %arg4[%c0_11, %c0_12] : memref<8x128xf32, #tpu.memory_space<vmem>>, vector<8x128xf32>
    %10 = vector.shape_cast %9 : vector<8x128xf32> to vector<1x8x128xf32>
    %11 = vector.broadcast %10 : vector<1x8x128xf32> to vector<8x8x128xf32>
    %12 = arith.addf %8, %11 : vector<8x8x128xf32>
    %13 = vector.shape_cast %12 : vector<8x8x128xf32> to vector<64x128xf32>
    %14 = arith.truncf %13 : vector<64x128xf32> to vector<64x128xbf16>
    %c0_13 = arith.constant 0 : index
    %c0_14 = arith.constant 0 : index
    %15 = vector.load %arg6[%c0_13, %c0_14] : memref<128x384xbf16, #tpu.memory_space<vmem>>, vector<128x384xbf16>
    %cst = arith.constant dense<0.000000e+00> : vector<64x384xf32>
    %16 = tpu.matmul %14, %15, %cst {dimension_numbers = #tpu.dot_dimension_numbers<[1], [0], [0], [1], [0, 0, 1, 1], [], []>} : vector<64x128xbf16>, vector<128x384xbf16>, vector<64x384xf32> -> vector<64x384xf32>
    %17 = vector.broadcast %0 : vector<1x384xf32> to vector<64x384xf32>
    %18 = arith.addf %16, %17 : vector<64x384xf32>
    %19 = vector.shape_cast %18 : vector<64x384xf32> to vector<1x64x384xf32>
    %20 = vector.extract_strided_slice %19 {offsets = [0, 0, 0], sizes = [1, 64, 128], strides = [1, 1, 1]} : vector<1x64x384xf32> to vector<1x64x128xf32>
    %cst_15 = arith.constant 0.17407766 : f32
    %21 = vector.broadcast %cst_15 : f32 to vector<1x64x128xf32>
    %22 = arith.mulf %20, %21 : vector<1x64x128xf32>
    %23 = vector.extract_strided_slice %19 {offsets = [0, 0, 128], sizes = [1, 64, 128], strides = [1, 1, 1]} : vector<1x64x384xf32> to vector<1x64x128xf32>
    %24 = arith.truncf %23 : vector<1x64x128xf32> to vector<1x64x128xbf16>
    %25 = vector.extract_strided_slice %19 {offsets = [0, 0, 256], sizes = [1, 64, 128], strides = [1, 1, 1]} : vector<1x64x384xf32> to vector<1x64x128xf32>
    %26 = arith.truncf %25 : vector<1x64x128xf32> to vector<1x64x128xbf16>
    %c0_16 = arith.constant 0 : index
    %c0_17 = arith.constant 0 : index
    %27 = vector.load %arg5[%c0_16, %c0_17] : memref<64x64xf32, #tpu.memory_space<vmem>>, vector<64x64xf32>
    %28 = vector.shape_cast %27 : vector<64x64xf32> to vector<1x64x64xf32>
    %c0_18 = arith.constant 0 : index
    %c0_19 = arith.constant 0 : index
    %c0_20 = arith.constant 0 : index
    %29 = vector.load %arg3[%c0_18, %c0_19, %c0_20] : memref<1x1x64xf32, #tpu.memory_space<vmem>>, vector<1x1x64xf32>
    %30 = vector.broadcast %29 : vector<1x1x64xf32> to vector<1x64x64xf32>
    %31 = arith.addf %28, %30 : vector<1x64x64xf32>
    %32 = tpu.iota {dimensions = array<i32: 2>} : vector<1x1x128xi32>
    %c0_i32 = arith.constant 0 : i32
    %33 = vector.broadcast %c0_i32 : i32 to vector<1x1x128xi32>
    %34 = arith.cmpi sge, %32, %33 : vector<1x1x128xi32>
    %c64_i32 = arith.constant 64 : i32
    %35 = vector.broadcast %c64_i32 : i32 to vector<1x1x128xi32>
    %36 = arith.cmpi slt, %32, %35 : vector<1x1x128xi32>
    %37 = arith.andi %34, %36 : vector<1x1x128xi1>
    %cst_21 = arith.constant 0.000000e+00 : f32
    %38 = vector.shape_cast %37 : vector<1x1x128xi1> to vector<1x1x128xi1>
    %39 = vector.broadcast %38 : vector<1x1x128xi1> to vector<1x64x128xi1>
    %40 = vector.broadcast %cst_21 : f32 to vector<1x64x128xf32>
    %41 = arith.select %39, %22, %40 : vector<1x64x128xi1>, vector<1x64x128xf32>
    %42 = arith.truncf %41 : vector<1x64x128xf32> to vector<1x64x128xbf16>
    "tpu.trace_start"() <{level = 10 : i32, message = "bnd,bmd->bnm"}> : () -> ()
    %cst_22 = arith.constant dense<0.000000e+00> : vector<1x64x64xf32>
    %43 = tpu.matmul %42, %24, %cst_22 {dimension_numbers = #tpu.dot_dimension_numbers<[2], [2], [1], [1], [0, 0, 0, 1, 1, 1], [0], [0]>} : vector<1x64x128xbf16>, vector<1x64x128xbf16>, vector<1x64x64xf32> -> vector<1x64x64xf32>
    "tpu.trace_stop"() : () -> ()
    %44 = arith.addf %43, %31 : vector<1x64x64xf32>
    %cst_23 = arith.constant dense<0xFF800000> : vector<1x64xf32>
    %45 = vector.multi_reduction <maximumf>, %44, %cst_23 [2] : vector<1x64x64xf32> to vector<1x64xf32>
    %46 = vector.shape_cast %45 : vector<1x64xf32> to vector<1x64x1xf32>
    %47 = vector.broadcast %46 : vector<1x64x1xf32> to vector<1x64x64xf32>
    %48 = arith.subf %44, %47 : vector<1x64x64xf32>
    %49 = math.exp %48 : vector<1x64x64xf32>
    %cst_24 = arith.constant dense<0.000000e+00> : vector<1x64xf32>
    %50 = vector.multi_reduction <add>, %49, %cst_24 [2] : vector<1x64x64xf32> to vector<1x64xf32>
    %51 = vector.shape_cast %50 : vector<1x64xf32> to vector<1x64x1xf32>
    %52 = tpu.reciprocal %51 {approx = true} : vector<1x64x1xf32> -> vector<1x64x1xf32>
    %53 = vector.broadcast %52 : vector<1x64x1xf32> to vector<1x64x64xf32>
    %54 = arith.mulf %49, %53 : vector<1x64x64xf32>
    %55 = arith.truncf %54 : vector<1x64x64xf32> to vector<1x64x64xbf16>
    "tpu.trace_start"() <{level = 10 : i32, message = "bnm,bmd->bnd"}> : () -> ()
    %cst_25 = arith.constant dense<0.000000e+00> : vector<1x64x128xf32>
    %56 = tpu.matmul %55, %26, %cst_25 {dimension_numbers = #tpu.dot_dimension_numbers<[2], [1], [1], [2], [0, 0, 0, 1, 1, 2], [0], [0]>} : vector<1x64x64xbf16>, vector<1x64x128xbf16>, vector<1x64x128xf32> -> vector<1x64x128xf32>
    %c64_i32_26 = arith.constant 64 : i32
    "tpu.trace_stop"() : () -> ()
    %57 = vector.broadcast %c64_i32_26 : i32 to vector<1x1x128xi32>
    %58 = arith.cmpi sge, %32, %57 : vector<1x1x128xi32>
    %c128_i32 = arith.constant 128 : i32
    %59 = vector.broadcast %c128_i32 : i32 to vector<1x1x128xi32>
    %60 = arith.cmpi slt, %32, %59 : vector<1x1x128xi32>
    %61 = arith.andi %58, %60 : vector<1x1x128xi1>
    %cst_27 = arith.constant 0.000000e+00 : f32
    %62 = vector.shape_cast %61 : vector<1x1x128xi1> to vector<1x1x128xi1>
    %63 = vector.broadcast %62 : vector<1x1x128xi1> to vector<1x64x128xi1>
    %64 = vector.broadcast %cst_27 : f32 to vector<1x64x128xf32>
    %65 = arith.select %63, %22, %64 : vector<1x64x128xi1>, vector<1x64x128xf32>
    %66 = arith.truncf %65 : vector<1x64x128xf32> to vector<1x64x128xbf16>
    "tpu.trace_start"() <{level = 10 : i32, message = "bnd,bmd->bnm"}> : () -> ()
    %cst_28 = arith.constant dense<0.000000e+00> : vector<1x64x64xf32>
    %67 = tpu.matmul %66, %24, %cst_28 {dimension_numbers = #tpu.dot_dimension_numbers<[2], [2], [1], [1], [0, 0, 0, 1, 1, 1], [0], [0]>} : vector<1x64x128xbf16>, vector<1x64x128xbf16>, vector<1x64x64xf32> -> vector<1x64x64xf32>
    "tpu.trace_stop"() : () -> ()
    %68 = arith.addf %67, %31 : vector<1x64x64xf32>
    %cst_29 = arith.constant dense<0xFF800000> : vector<1x64xf32>
    %69 = vector.multi_reduction <maximumf>, %68, %cst_29 [2] : vector<1x64x64xf32> to vector<1x64xf32>
    %70 = vector.shape_cast %69 : vector<1x64xf32> to vector<1x64x1xf32>
    %71 = vector.broadcast %70 : vector<1x64x1xf32> to vector<1x64x64xf32>
    %72 = arith.subf %68, %71 : vector<1x64x64xf32>
    %73 = math.exp %72 : vector<1x64x64xf32>
    %cst_30 = arith.constant dense<0.000000e+00> : vector<1x64xf32>
    %74 = vector.multi_reduction <add>, %73, %cst_30 [2] : vector<1x64x64xf32> to vector<1x64xf32>
    %75 = vector.shape_cast %74 : vector<1x64xf32> to vector<1x64x1xf32>
    %76 = tpu.reciprocal %75 {approx = true} : vector<1x64x1xf32> -> vector<1x64x1xf32>
    %77 = vector.broadcast %76 : vector<1x64x1xf32> to vector<1x64x64xf32>
    %78 = arith.mulf %73, %77 : vector<1x64x64xf32>
    %79 = arith.truncf %78 : vector<1x64x64xf32> to vector<1x64x64xbf16>
    "tpu.trace_start"() <{level = 10 : i32, message = "bnm,bmd->bnd"}> : () -> ()
    %cst_31 = arith.constant dense<0.000000e+00> : vector<1x64x128xf32>
    %80 = tpu.matmul %79, %26, %cst_31 {dimension_numbers = #tpu.dot_dimension_numbers<[2], [1], [1], [2], [0, 0, 0, 1, 1, 2], [0], [0]>} : vector<1x64x64xbf16>, vector<1x64x128xbf16>, vector<1x64x128xf32> -> vector<1x64x128xf32>
    %c64_i32_32 = arith.constant 64 : i32
    "tpu.trace_stop"() : () -> ()
    %81 = vector.broadcast %c64_i32_32 : i32 to vector<1x1x128xi32>
    %82 = arith.cmpi slt, %32, %81 : vector<1x1x128xi32>
    %83 = vector.shape_cast %82 : vector<1x1x128xi1> to vector<1x1x128xi1>
    %84 = vector.broadcast %83 : vector<1x1x128xi1> to vector<1x64x128xi1>
    %85 = arith.select %84, %56, %80 : vector<1x64x128xi1>, vector<1x64x128xf32>
    %86 = vector.shape_cast %85 : vector<1x64x128xf32> to vector<64x128xf32>
    %87 = arith.truncf %86 : vector<64x128xf32> to vector<64x128xbf16>
    %c0_33 = arith.constant 0 : index
    %c0_34 = arith.constant 0 : index
    %88 = vector.load %arg7[%c0_33, %c0_34] : memref<128x128xbf16, #tpu.memory_space<vmem>>, vector<128x128xbf16>
    %cst_35 = arith.constant dense<0.000000e+00> : vector<64x128xf32>
    %89 = tpu.matmul %87, %88, %cst_35 {dimension_numbers = #tpu.dot_dimension_numbers<[1], [0], [0], [1], [0, 0, 1, 1], [], []>} : vector<64x128xbf16>, vector<128x128xbf16>, vector<64x128xf32> -> vector<64x128xf32>
    %90 = vector.broadcast %2 : vector<1x128xf32> to vector<64x128xf32>
    %91 = arith.addf %89, %90 : vector<64x128xf32>
    %92 = tpu.iota {dimensions = array<i32: 1>} : vector<1x128xi32>
    %c66_i32 = arith.constant 66 : i32
    %93 = vector.broadcast %c66_i32 : i32 to vector<1x128xi32>
    %94 = arith.cmpi slt, %92, %93 : vector<1x128xi32>
    %95 = arith.extui %94 : vector<1x128xi1> to vector<1x128xi32>
    %96 = arith.sitofp %95 : vector<1x128xi32> to vector<1x128xf32>
    %97 = arith.addf %13, %91 : vector<64x128xf32>
    %cst_36 = arith.constant dense<0.000000e+00> : vector<64xf32>
    %98 = vector.multi_reduction <add>, %97, %cst_36 [1] : vector<64x128xf32> to vector<64xf32>
    %99 = vector.shape_cast %98 : vector<64xf32> to vector<64x1xf32>
    %cst_37 = arith.constant 0.0151515156 : f32
    %100 = vector.broadcast %cst_37 : f32 to vector<64x1xf32>
    %101 = arith.mulf %99, %100 : vector<64x1xf32>
    %102 = vector.broadcast %101 : vector<64x1xf32> to vector<64x128xf32>
    %103 = arith.subf %97, %102 : vector<64x128xf32>
    %104 = vector.broadcast %96 : vector<1x128xf32> to vector<64x128xf32>
    %105 = arith.mulf %103, %104 : vector<64x128xf32>
    %106 = arith.mulf %105, %105 : vector<64x128xf32>
    %cst_38 = arith.constant dense<0.000000e+00> : vector<64xf32>
    %107 = vector.multi_reduction <add>, %106, %cst_38 [1] : vector<64x128xf32> to vector<64xf32>
    %108 = vector.shape_cast %107 : vector<64xf32> to vector<64x1xf32>
    %cst_39 = arith.constant 0.0151515156 : f32
    %109 = vector.broadcast %cst_39 : f32 to vector<64x1xf32>
    %110 = arith.mulf %108, %109 : vector<64x1xf32>
    %cst_40 = arith.constant 9.99999974E-6 : f32
    %111 = vector.broadcast %cst_40 : f32 to vector<64x1xf32>
    %112 = arith.addf %110, %111 : vector<64x1xf32>
    %113 = math.rsqrt %112 : vector<64x1xf32>
    %114 = vector.broadcast %113 : vector<64x1xf32> to vector<64x128xf32>
    %115 = arith.mulf %105, %114 : vector<64x128xf32>
    %116 = vector.broadcast %3 : vector<1x128xf32> to vector<64x128xf32>
    %117 = arith.mulf %115, %116 : vector<64x128xf32>
    %118 = vector.broadcast %4 : vector<1x128xf32> to vector<64x128xf32>
    %119 = arith.addf %117, %118 : vector<64x128xf32>
    %120 = arith.truncf %119 : vector<64x128xf32> to vector<64x128xbf16>
    %c0_41 = arith.constant 0 : index
    %c0_42 = arith.constant 0 : index
    %121 = vector.load %arg8[%c0_41, %c0_42] : memref<128x384xbf16, #tpu.memory_space<vmem>>, vector<128x384xbf16>
    %cst_43 = arith.constant dense<0.000000e+00> : vector<64x384xf32>
    %122 = tpu.matmul %120, %121, %cst_43 {dimension_numbers = #tpu.dot_dimension_numbers<[1], [0], [0], [1], [0, 0, 1, 1], [], []>} : vector<64x128xbf16>, vector<128x384xbf16>, vector<64x384xf32> -> vector<64x384xf32>
    %123 = vector.broadcast %1 : vector<1x384xf32> to vector<64x384xf32>
    %124 = arith.addf %122, %123 : vector<64x384xf32>
    %cst_44 = arith.constant 0.000000e+00 : f32
    %125 = vector.broadcast %cst_44 : f32 to vector<64x384xf32>
    %126 = arith.maximumf %124, %125 : vector<64x384xf32>
    %127 = arith.truncf %126 : vector<64x384xf32> to vector<64x384xbf16>
    %c0_45 = arith.constant 0 : index
    %c0_46 = arith.constant 0 : index
    %128 = vector.load %arg9[%c0_45, %c0_46] : memref<384x128xbf16, #tpu.memory_space<vmem>>, vector<384x128xbf16>
    %cst_47 = arith.constant dense<0.000000e+00> : vector<64x128xf32>
    %129 = tpu.matmul %127, %128, %cst_47 {dimension_numbers = #tpu.dot_dimension_numbers<[1], [0], [0], [1], [0, 0, 1, 1], [], []>} : vector<64x384xbf16>, vector<384x128xbf16>, vector<64x128xf32> -> vector<64x128xf32>
    %130 = vector.broadcast %5 : vector<1x128xf32> to vector<64x128xf32>
    %131 = arith.addf %129, %130 : vector<64x128xf32>
    %132 = arith.addf %119, %131 : vector<64x128xf32>
    %cst_48 = arith.constant dense<0.000000e+00> : vector<64xf32>
    %133 = vector.multi_reduction <add>, %132, %cst_48 [1] : vector<64x128xf32> to vector<64xf32>
    %134 = vector.shape_cast %133 : vector<64xf32> to vector<64x1xf32>
    %cst_49 = arith.constant 0.0151515156 : f32
    %135 = vector.broadcast %cst_49 : f32 to vector<64x1xf32>
    %136 = arith.mulf %134, %135 : vector<64x1xf32>
    %137 = vector.broadcast %136 : vector<64x1xf32> to vector<64x128xf32>
    %138 = arith.subf %132, %137 : vector<64x128xf32>
    %139 = vector.broadcast %96 : vector<1x128xf32> to vector<64x128xf32>
    %140 = arith.mulf %138, %139 : vector<64x128xf32>
    %141 = arith.mulf %140, %140 : vector<64x128xf32>
    %cst_50 = arith.constant dense<0.000000e+00> : vector<64xf32>
    %142 = vector.multi_reduction <add>, %141, %cst_50 [1] : vector<64x128xf32> to vector<64xf32>
    %143 = vector.shape_cast %142 : vector<64xf32> to vector<64x1xf32>
    %cst_51 = arith.constant 0.0151515156 : f32
    %144 = vector.broadcast %cst_51 : f32 to vector<64x1xf32>
    %145 = arith.mulf %143, %144 : vector<64x1xf32>
    %cst_52 = arith.constant 9.99999974E-6 : f32
    %146 = vector.broadcast %cst_52 : f32 to vector<64x1xf32>
    %147 = arith.addf %145, %146 : vector<64x1xf32>
    %148 = math.rsqrt %147 : vector<64x1xf32>
    %149 = vector.broadcast %148 : vector<64x1xf32> to vector<64x128xf32>
    %150 = arith.mulf %140, %149 : vector<64x128xf32>
    %151 = vector.broadcast %6 : vector<1x128xf32> to vector<64x128xf32>
    %152 = arith.mulf %150, %151 : vector<64x128xf32>
    %153 = vector.broadcast %7 : vector<1x128xf32> to vector<64x128xf32>
    %154 = arith.addf %152, %153 : vector<64x128xf32>
    %155 = vector.shape_cast %154 : vector<64x128xf32> to vector<8x8x128xf32>
    %c0_53 = arith.constant 0 : index
    %c0_54 = arith.constant 0 : index
    %c0_55 = arith.constant 0 : index
    %156 = vector.load %arg2[%c0_53, %c0_54, %c0_55] : memref<8x8x1xf32, #tpu.memory_space<vmem>>, vector<8x8x1xf32>
    %157 = vector.broadcast %156 : vector<8x8x1xf32> to vector<8x8x128xf32>
    %158 = arith.mulf %155, %157 : vector<8x8x128xf32>
    %cst_56 = arith.constant dense<0.000000e+00> : vector<8x128xf32>
    %159 = vector.multi_reduction <add>, %158, %cst_56 [1] : vector<8x8x128xf32> to vector<8x128xf32>
    %cst_57 = arith.constant 0.142857149 : f32
    %160 = vector.broadcast %cst_57 : f32 to vector<8x128xf32>
    %161 = arith.mulf %159, %160 : vector<8x128xf32>
    %c0_58 = arith.constant 0 : index
    %c0_59 = arith.constant 0 : index
    %162 = vector.load %arg11[%c0_58, %c0_59] : memref<8x128xf32, #tpu.memory_space<vmem>>, vector<8x128xf32>
    tpu.vector_store %arg11[%c0_58, %c0_59], %161 {strides = array<i32>} : memref<8x128xf32, #tpu.memory_space<vmem>>, vector<8x128xf32>,
    return
  }
  func.func @transform_0(%arg0: i32) -> (i32, i32, i32) {
    %c0_i32 = arith.constant 0 : i32
    %c0_i32_0 = arith.constant 0 : i32
    %c0_i32_1 = arith.constant 0 : i32
    return %arg0, %c0_i32, %c0_i32_0 : i32, i32, i32
  }
  func.func @transform_1(%arg0: i32) -> (i32, i32, i32) {
    %c0_i32 = arith.constant 0 : i32
    %c0_i32_0 = arith.constant 0 : i32
    %c0_i32_1 = arith.constant 0 : i32
    return %arg0, %c0_i32, %c0_i32_0 : i32, i32, i32
  }
  func.func @transform_2(%arg0: i32) -> (i32, i32, i32) {
    %c0_i32 = arith.constant 0 : i32
    %c0_i32_0 = arith.constant 0 : i32
    %c0_i32_1 = arith.constant 0 : i32
    return %arg0, %c0_i32, %c0_i32_0 : i32, i32, i32
  }
  func.func @transform_3(%arg0: i32) -> (i32, i32) {
    %c0_i32 = arith.constant 0 : i32
    %c0_i32_0 = arith.constant 0 : i32
    %c0_i32_1 = arith.constant 0 : i32
    return %c0_i32, %c0_i32_0 : i32, i32
  }
  func.func @transform_4(%arg0: i32) -> (i32, i32) {
    %c0_i32 = arith.constant 0 : i32
    %c0_i32_0 = arith.constant 0 : i32
    %c0_i32_1 = arith.constant 0 : i32
    return %c0_i32, %c0_i32_0 : i32, i32
  }
  func.func @transform_5(%arg0: i32) -> (i32, i32) {
    %c0_i32 = arith.constant 0 : i32
    %c0_i32_0 = arith.constant 0 : i32
    %c0_i32_1 = arith.constant 0 : i32
    return %c0_i32, %c0_i32_0 : i32, i32
  }
  func.func @transform_6(%arg0: i32) -> (i32, i32) {
    %c0_i32 = arith.constant 0 : i32
    %c0_i32_0 = arith.constant 0 : i32
    %c0_i32_1 = arith.constant 0 : i32
    return %c0_i32, %c0_i32_0 : i32, i32
  }
  func.func @transform_7(%arg0: i32) -> (i32, i32) {
    %c0_i32 = arith.constant 0 : i32
    %c0_i32_0 = arith.constant 0 : i32
    %c0_i32_1 = arith.constant 0 : i32
    return %c0_i32, %c0_i32_0 : i32, i32
  }
  func.func @transform_8(%arg0: i32) -> (i32, i32) {
    %c0_i32 = arith.constant 0 : i32
    %c0_i32_0 = arith.constant 0 : i32
    %c0_i32_1 = arith.constant 0 : i32
    return %c0_i32, %c0_i32_0 : i32, i32
  }
  func.func @transform_9(%arg0: i32) -> (i32, i32) {
    %c0_i32 = arith.constant 0 : i32
    %c0_i32_0 = arith.constant 0 : i32
    %c0_i32_1 = arith.constant 0 : i32
    return %c0_i32, %c0_i32_0 : i32, i32
  }
  func.func @transform_10(%arg0: i32) -> (i32, i32) {
    %c0_i32 = arith.constant 0 : i32
    %c0_i32_0 = arith.constant 0 : i32
    return %arg0, %c0_i32 : i32, i32
  }
}

</mosaic_0001>

<bundles_post_ra>
// kernel: tpu_custom_call.1
= control target key start
LH: loop header
LB: loop body
LE: loop exit
PB: predicated region body
PF: predicated region fallthrough
CT: control target
= control target key end

     0   :  { %15 = vsyncpa [#allocation3], 0  ;;  %s3628_s0 = inlined_call_operand.vmem [shape: f32[8,8,128], index: 0, kind: input, shape index: {}]   ;;  %s3629_s1 = inlined_call_operand.vmem [shape: f32[8,8,1], index: 1, kind: input, shape index: {}]   ;;  %s3630_s2 = inlined_call_operand.vmem [shape: f32[1,1,64], index: 2, kind: input, shape index: {}]   ;;  %s3631_s3 = inlined_call_operand.vmem [shape: f32[8,128], index: 3, kind: input, shape index: {}]   ;;  %s3632_s4 = inlined_call_operand.hbm [shape: f32[64,64], index: 4, kind: input, shape index: {}]   ;;  %s3633_s5 = inlined_call_operand.hbm [shape: bf16[128,384], index: 5, kind: input, shape index: {}]   ;;  %s3634_s6 = inlined_call_operand.hbm [shape: bf16[128,128], index: 6, kind: input, shape index: {}]   ;;  %s3635_s7 = inlined_call_operand.hbm [shape: bf16[128,384], index: 7, kind: input, shape index: {}]   ;;  %s3636_s8 = inlined_call_operand.hbm [shape: bf16[384,128], index: 8, kind: input, shape index: {}]   ;;  %s3637_s9 = inlined_call_operand.hbm [shape: f32[8,384], index: 9, kind: input, shape index: {}]   ;;  %s3638_s10 = inlined_call_operand.hbm [shape: f32[8,128], index: 10, kind: output, shape index: {}]  }
   0x1   :  { %16 = vsyncpa [#allocation6], 0 }
   0x2   :  { %17 = vsyncpa [#allocation9], 0 }
   0x3   :  { %18 = vsyncpa [#allocation12], 0  ;;  %s45_s15 = sshll.u32 %s3633_s5, 4  ;;  %s46_s15 = int_to_ptr.hbm [resolvable:$true] %s45_s15 }
   0x4   :  { %19 = vsyncpa [#allocation4], 0  ;;  %s2911_s16 = smov [#allocation5]   ;;  %s71_s20 = sshll.u32 %s3635_s7, 4  ;;  %s72_s20 = int_to_ptr.hbm [resolvable:$true] %s71_s20 }
   0x5   :  { %s47_s17 = sshll.u32 %s2911_s16, 4  ;;  %s2912_s21 = smov 192   ;;  %s48_s17 = int_to_ptr.vmem [resolvable:$true] %s47_s17 }
   0x6   :  { %s2913_s22 = smov 12   ;;  %s2914_s23 = smov [#allocation8]  }
   0x7   :  { %53 = dma.hbm_to_vmem [thread:$0]  %s46_s15, 3072, %s48_s17, [#allocation6], %s2912_s21, %s2912_s21, %s2913_s22  }
   0x8   :  { %s73_s24 = sshll.u32 %s2914_s23, 4  ;;  %s32_s27 = sshll.u32 %s3632_s4, 4  ;;  %s74_s24 = int_to_ptr.vmem [resolvable:$true] %s73_s24  ;;  %s33_s27 = int_to_ptr.hbm [resolvable:$true] %s32_s27 }
   0x9   :  { %79 = dma.hbm_to_vmem [thread:$0]  %s72_s20, 3072, %s74_s24, [#allocation9], %s2912_s21, %s2912_s21, %s2913_s22  }
   0xa   :  { %s2915_s5 = smov [#allocation2]   ;;  %s58_s7 = sshll.u32 %s3634_s6, 4  ;;  %s59_s7 = int_to_ptr.hbm [resolvable:$true] %s58_s7 }
   0xb   :  { %s34_s28 = sshll.u32 %s2915_s5, 4  ;;  %s2916_s11 = smov 128   ;;  %s35_s28 = int_to_ptr.vmem [resolvable:$true] %s34_s28 }
   0xc   :  { %s2917_s12 = smov 8   ;;  %s2918_s13 = smov [#allocation7]  }
   0xd   :  { %40 = dma.hbm_to_vmem [thread:$0]  %s33_s27, 1024, %s35_s28, [#allocation3], %s2916_s11, %s2916_s11, %s2917_s12  }
   0xe   :  { %s60_s14 = sshll.u32 %s2918_s13, 4  ;;  %s2919_s15 = smov 64   ;;  %s61_s14 = int_to_ptr.vmem [resolvable:$true] %s60_s14 }
   0xf   :  { %s2920_s16 = smov 4   ;;  %s84_s18 = sshll.u32 %s3636_s8, 4  ;;  %s85_s18 = int_to_ptr.hbm [resolvable:$true] %s84_s18 }
  0x10   :  { %66 = dma.hbm_to_vmem [thread:$0]  %s59_s7, 1024, %s61_s14, [#allocation6], %s2919_s15, %s2919_s15, %s2920_s16  }
  0x11   :  { %s2921_s19 = smov [#allocation10]   ;;  %s98_s22 = sshll.u32 %s3637_s9, 4  ;;  %s99_s22 = int_to_ptr.hbm [resolvable:$true] %s98_s22 }
  0x12   :  { %s86_s20 = sshll.u32 %s2921_s19, 4  ;;  %s2922_s23 = smov [#allocation11]   ;;  %s87_s20 = int_to_ptr.vmem [resolvable:$true] %s86_s20 }
  0x13   :  { %92 = dma.hbm_to_vmem [thread:$0]  %s85_s18, 3072, %s87_s20, [#allocation9], %s2919_s15, %s2919_s15, %s2920_s16  }
  0x14   :  { %s100_s24 = sshll.u32 %s2922_s23, 4  ;;  %s101_s24 = int_to_ptr.vmem [resolvable:$true] %s100_s24 }
  0x15   :  { %103 = dma.hbm_to_vmem [thread:$0]  %s99_s22, 384, %s101_s24, [#allocation12]  }
  0x16   :  { %2901 = dma.done.wait [#allocation3], 1024  }
  0x17   :  { %2902 = vsyncadd [#allocation3], 4294966272 }
  0x18   :  { %2903 = dma.done.wait [#allocation6], 4096  }
  0x19   :  { %2904 = vsyncadd [#allocation6], 4294963200 }
  0x1a   :  { %2905 = dma.done.wait [#allocation9], 6144  }
  0x1b   :  { %2906 = vsyncadd [#allocation9], 4294961152 }
  0x1c   :  { %2907 = dma.done.wait [#allocation12], 384  }
  0x1d   :  { %2908 = vsyncadd [#allocation12], 4294966912  ;;  %v2543_v0 = vld [vmem:[#allocation5 + $0xac] sm:$0xf]  ;;  %v2281_v1 = vld [vmem:[#allocation5 + $0xb4] sm:$0xf0] }
  0x1e   :  { %v2540_v2 = vld [vmem:[#allocation5 + $0x94] sm:$0xf]  ;;  %v2284_v3 = vor.u32 %v2543_v0, %v2281_v1  ;;  %v2269_v4 = vld [vmem:[#allocation5 + $0x9c] sm:$0xf0]  ;;  %v2537_v6 = vld [vmem:[#allocation5 + $0x7c] sm:$0xf] }
  0x1f   :  { %v2272_v5 = vor.u32 %v2540_v2, %v2269_v4  ;;  %v2257_v7 = vld [vmem:[#allocation5 + $0x84] sm:$0xf0]  ;;  %v2544_v9 = vld [vmem:[#allocation5 + $0xb0] sm:$0xf0]  ;;  %v2267_v12 = vld [vmem:[#allocation5 + $0x90] sm:$0xf] }
  0x20   :  { %2610 = vmatpush.bf16.msra.mxu3 %v2284_v3  ;;  %355 = vmatpush.bf16.msra.mxu1 %v2284_v3  ;;  %v2279_v8 = vld [vmem:[#allocation5 + $0xa8] sm:$0xf]  ;;  %v2260_v10 = vor.u32 %v2537_v6, %v2257_v7  ;;  %v2534_v13 = vld [vmem:[#allocation5 + $0x64] sm:$0xf]  ;;  %v2245_v14 = vld [vmem:[#allocation5 + $0x6c] sm:$0xf0] }
  0x21   :  { %v2280_v11 = vor.u32 %v2544_v9, %v2279_v8  ;;  %v2541_v15 = vld [vmem:[#allocation5 + $0x98] sm:$0xf0]  ;;  %v2248_v17 = vor.u32 %v2534_v13, %v2245_v14  ;;  %v2531_v18 = vld [vmem:[#allocation5 + $0x4c] sm:$0xf]  ;;  %v2233_v19 = vld [vmem:[#allocation5 + $0x54] sm:$0xf0] }
  0x22   :  { %v2268_v16 = vor.u32 %v2541_v15, %v2267_v12  ;;  %v2236_v20 = vor.u32 %v2531_v18, %v2233_v19  ;;  %v2528_v21 = vld [vmem:[#allocation5 + $0x34] sm:$0xf]  ;;  %v2221_v22 = vld [vmem:[#allocation5 + $0x3c] sm:$0xf0]  ;;  %v2255_v23 = vld [vmem:[#allocation5 + $0x78] sm:$0xf] }
  0x23   :  { %326 = vmatpush.bf16.msra.mxu0 %v2280_v11  ;;  %2602 = vmatpush.bf16.msra.mxu2 %v2280_v11  ;;  %v2538_v24 = vld [vmem:[#allocation5 + $0x80] sm:$0xf0]  ;;  %v2243_v25 = vld [vmem:[#allocation5 + $0x60] sm:$0xf]  ;;  %v2224_v26 = vor.u32 %v2528_v21, %v2221_v22  ;;  %v2535_v28 = vld [vmem:[#allocation5 + $0x68] sm:$0xf0] }
  0x24   :  { %2611 = vmatpush.bf16.msra.mxu3 %v2272_v5  ;;  %356 = vmatpush.bf16.msra.mxu1 %v2272_v5  ;;  %v2256_v27 = vor.u32 %v2538_v24, %v2255_v23  ;;  %v2525_v29 = vld [vmem:[#allocation5 + $0x1c] sm:$0xf]  ;;  %v2209_v30 = vld [vmem:[#allocation5 + $0x24] sm:$0xf0]  ;;  %v142_v31 = vld [vmem:[%s3628_s0 + $0x20] sm:$0xff]  ;;  %v2244_v32 = vor.u32 %v2535_v28, %v2243_v25  ;;  %vm557_vm2 = vcmask 523264  }
  0x25   :  { %v143_v33 = vld [vmem:[%s3628_s0 + $0x28] sm:$0xff]  ;;  %v2532_v35 = vld [vmem:[#allocation5 + $0x50] sm:$0xf0]  ;;  %v2212_v36 = vor.u32 %v2525_v29, %v2209_v30  ;;  %v146_v37 = vld [vmem:[%s3631_s3] sm:$0xff]  ;;  %s2180_s3 = sshll.u32 %s3638_s10, 4  ;;  %s2181_s3 = int_to_ptr.hbm [resolvable:$true] %s2180_s3 }
  0x26   :  { %v2231_v34 = vld [vmem:[#allocation5 + $0x48] sm:$0xf]  ;;  %v138_v38 = vld [vmem:[%s3628_s0] sm:$0xff]  ;;  %v2197_v41 = vld [vmem:[#allocation5 + $0xc] sm:$0xf0]  ;;  %v3014_v43 = vadd.f32 %v146_v37, %v142_v31  ;;  %v3016_v44 = vadd.f32 %v146_v37, %v143_v33 }
  0x27   :  { %327 = vmatpush.bf16.msra.mxu0 %v2268_v16  ;;  %2603 = vmatpush.bf16.msra.mxu2 %v2268_v16  ;;  %v139_v39 = vld [vmem:[%s3628_s0 + $0x8] sm:$0xff]  ;;  %v2522_v40 = vld [vmem:[#allocation5 + $0x4] sm:$0xf]  ;;  %v2232_v42 = vor.u32 %v2532_v35, %v2231_v34  ;;  %v3018_v45 = vadd.f32 %v146_v37, %v138_v38  ;;  %v2219_v47 = vld [vmem:[#allocation5 + $0x30] sm:$0xf] }
  0x28   :  { %2612 = vmatpush.bf16.msra.mxu3 %v2260_v10  ;;  %357 = vmatpush.bf16.msra.mxu1 %v2260_v10  ;;  %v3020_v46 = vadd.f32 %v146_v37, %v139_v39  ;;  %v2529_v48 = vld [vmem:[#allocation5 + $0x38] sm:$0xf0]  ;;  %v2200_v49 = vor.u32 %v2522_v40, %v2197_v41  ;;  %v3024_v51 = vpack.c.bf16 %v3016_v44, %v3014_v43  ;;  %v2207_v53 = vld [vmem:[#allocation5 + $0x18] sm:$0xf]  ;;  %v2526_v54 = vld [vmem:[#allocation5 + $0x20] sm:$0xf0] }
  0x29   :  { %v2220_v50 = vor.u32 %v2529_v48, %v2219_v47  ;;  %v2208_v55 = vor.u32 %v2526_v54, %v2207_v53  ;;  %v2195_v56 = vld [vmem:[#allocation5] sm:$0xf]  ;;  %v2523_v57 = vld [vmem:[#allocation5 + $0x8] sm:$0xf0]  ;;  %v144_v59 = vld [vmem:[%s3628_s0 + $0x30] sm:$0xff] }
  0x2a   :  { %v3028_v52 = vpack.c.bf16 %v3020_v46, %v3018_v45  ;;  %v2196_v58 = vor.u32 %v2523_v57, %v2195_v56  ;;  %v145_v60 = vld [vmem:[%s3628_s0 + $0x38] sm:$0xff]  ;;  %v140_v61 = vld [vmem:[%s3628_s0 + $0x10] sm:$0xff]  ;;  %v3044_v63 = vadd.f32 %v146_v37, %v144_v59 }
  0x2b   :  { %328 = vmatpush.bf16.msra.mxu0 %v2256_v27  ;;  %2604 = vmatpush.bf16.msra.mxu2 %v2256_v27  ;;  %v141_v62 = vld [vmem:[%s3628_s0 + $0x18] sm:$0xff]  ;;  %v3046_v0 = vadd.f32 %v146_v37, %v145_v60  ;;  %v3048_v1 = vadd.f32 %v146_v37, %v140_v61  ;;  %v3066_v9 = vld [vmem:[#allocation11] ss:$8 sm:$0x7] }
  0x2c   :  { %2613 = vmatpush.bf16.msra.mxu3 %v2248_v17  ;;  %358 = vmatpush.bf16.msra.mxu1 %v2248_v17  ;;  %v3050_v2 = vadd.f32 %v146_v37, %v141_v62  ;;  %v193_v11 = vperm.slane %v3066_v9, 1  ;;  %v3070_v34 = vperm.slane %v3066_v9, 0 }
  0x2d   :  { %v3056_v3 = vpack.c.bf16 %v3046_v0, %v3044_v63 }
  0x2e   :  { %v3060_v4 = vpack.c.bf16 %v3050_v2, %v3048_v1 }
  0x2f   :  { %329 = vmatpush.bf16.msra.mxu0 %v2244_v32  ;;  %2605 = vmatpush.bf16.msra.mxu2 %v2244_v32 }
  0x30   :  { %2614 = vmatpush.bf16.msra.mxu3 %v2236_v20  ;;  %359 = vmatpush.bf16.msra.mxu1 %v2236_v20 }
  0x33   :  { %330 = vmatpush.bf16.msra.mxu0 %v2232_v42  ;;  %2606 = vmatpush.bf16.msra.mxu2 %v2232_v42 }
  0x34   :  { %2615 = vmatpush.bf16.msra.mxu3 %v2224_v26  ;;  %360 = vmatpush.bf16.msra.mxu1 %v2224_v26 }
  0x37   :  { %331 = vmatpush.bf16.msra.mxu0 %v2220_v50  ;;  %2607 = vmatpush.bf16.msra.mxu2 %v2220_v50 }
  0x38   :  { %2616 = vmatpush.bf16.msra.mxu3 %v2212_v36  ;;  %361 = vmatpush.bf16.msra.mxu1 %v2212_v36  ;;  %v457_v36 = vlaneseq }
  0x3a   :  { %v3074_v47 = vand.u32 127, %v457_v36 }
  0x3b   :  { %332 = vmatpush.bf16.msra.mxu0 %v2208_v55  ;;  %2608 = vmatpush.bf16.msra.mxu2 %v2208_v55 }
  0x3c   :  { %2617 = vmatpush.bf16.msra.mxu3 %v2200_v49  ;;  %362 = vmatpush.bf16.msra.mxu1 %v2200_v49  ;;  %vm460_vm0 = vcmp.lt.s32.totalorder %v3074_v47, 64  ;;  %vm739_vm1 = vcmp.ge.s32.totalorder %v3074_v47, 64  ;;  %vm1077_vm3 = vcmp.lt.s32.totalorder %v3074_v47, 66 }
  0x3f   :  { %373 = vmatmul.bf16.vlgmr.msra.gmra.mxu3 %v3024_v51  ;;  %363 = vmatmul.bf16.vlgmr.msra.gmra.mxu1 %v3028_v52 }
  0x40   :  { %333 = vmatpush.bf16.msra.mxu0 %v2196_v58  ;;  %2609 = vmatpush.bf16.msra.mxu2 %v2196_v58 }
  0x43   :  { %334 = vmatmul.bf16.vlgmr.msra.gmra.mxu0 %v3028_v52  ;;  %344 = vmatmul.bf16.vlgmr.msra.gmra.mxu2 %v3024_v51 }
  0x4f   :  { %378 = vmatmul.bf16.gmra.mxu3 %v3056_v3  ;;  %368 = vmatmul.bf16.gmra.mxu1 %v3060_v4 }
  0x53   :  { %339 = vmatmul.bf16.gmra.mxu0 %v3060_v4  ;;  %349 = vmatmul.bf16.gmra.mxu2 %v3056_v3 }
  0xbc   :  { %v364_v6 = vpop.f32.mrf.mxu1 }
  0xbd   :  { %v365_v37 = vadd.f32 %v364_v6, %v193_v11 }
  0xbf   :  { %v421_v49 = vpack.c.bf16 %v365_v37, %v365_v37 }
  0xc0   :  { %v335_v17 = vpop.f32.mrf.mxu0 }
  0xc1   :  { %v336_v41 = vadd.f32 %v335_v17, %v3070_v34  ;;  %v512_v56 = vunpack.c.l.b16 %v421_v49 }
  0xc2   :  { %v374_v5 = vpop.f32.mrf.mxu3 }
  0xc3   :  { %v375_v20 = vadd.f32 %v374_v5, %v193_v11  ;;  %v413_v53 = vmul.f32 0.17407766, %v336_v41 }
  0xc4   :  { %v366_v8 = vpop.f32.mrf.mxu1 }
  0xc5   :  { %v425_v26 = vpack.c.bf16 %v375_v20, %v375_v20  ;;  %v367_v38 = vadd.f32 %v366_v8, %v193_v11  ;;  %v464_v58 = vsel %vm460_vm0, %v413_v53, 0.0  ;;  %v744_v59 = vsel %vm739_vm1, %v413_v53, 0.0  ;;  %v2545_v53 = vld [vmem:[#allocation5 + $0xb8] sm:$0xf0] }
  0xc6   :  { %v472_v62 = vpack.c.bf16 %v464_v58, %v464_v58  ;;  %v752_v5 = vpack.c.bf16 %v744_v59, %v744_v59  ;;  %v2542_v58 = vld [vmem:[#allocation5 + $0xa0] sm:$0xf0] }
  0xc7   :  { %v516_v31 = vunpack.c.l.b16 %v425_v26  ;;  %v422_v50 = vpack.c.bf16 %v367_v38, %v367_v38 }
  0xc8   :  { %v337_v30 = vpop.f32.mrf.mxu0 }
  0xc9   :  { %v338_v42 = vadd.f32 %v337_v30, %v3070_v34  ;;  %v513_v57 = vunpack.c.l.b16 %v422_v50  ;;  %v2287_v50 = vld [vmem:[#allocation5 + $0xb0] sm:$0xf] }
  0xca   :  { %v376_v7 = vpop.f32.mrf.mxu3 }
  0xcb   :  { %v377_v18 = vadd.f32 %v376_v7, %v193_v11  ;;  %v414_v54 = vmul.f32 0.17407766, %v338_v42 }
  0xcc   :  { %v369_v13 = vpop.f32.mrf.mxu1 }
  0xcd   :  { %v426_v23 = vpack.c.bf16 %v377_v18, %v377_v18  ;;  %v370_v28 = vadd.f32 %v369_v13, %v193_v11  ;;  %v465_v60 = vsel %vm460_vm0, %v414_v54, 0.0  ;;  %v745_v61 = vsel %vm739_vm1, %v414_v54, 0.0 }
  0xce   :  { %v473_v6 = vpack.c.bf16 %v465_v60, %v465_v60  ;;  %v753_v7 = vpack.c.bf16 %v745_v61, %v745_v61 }
  0xcf   :  { %v517_v27 = vunpack.c.l.b16 %v426_v23  ;;  %v423_v32 = vpack.c.bf16 %v370_v28, %v370_v28 }
  0xd0   :  { %v340_v48 = vpop.f32.mrf.mxu0  ;;  %v769_v17 = vunpack.c.l.b16 %v753_v7  ;;  %v2539_v7 = vld [vmem:[#allocation5 + $0x88] sm:$0xf0] }
  0xd1   :  { %v522_v35 = vpack.c.b16 %v517_v27, %v516_v31  ;;  %v514_v39 = vunpack.c.l.b16 %v423_v32 }
  0xd2   :  { %v379_v10 = vpop.f32.mrf.mxu3 }
  0xd3   :  { %v380_v12 = vadd.f32 %v379_v10, %v193_v11  ;;  %v520_v10 = vpack.c.b16 %v513_v57, %v512_v56  ;;  %v2288_v56 = vor.u32 %v2545_v53, %v2287_v50  ;;  %v2275_v57 = vld [vmem:[#allocation5 + $0x98] sm:$0xf]  ;;  %v2527_v50 = vld [vmem:[#allocation5 + $0x28] sm:$0xf0] }
  0xd4   :  { %v371_v25 = vpop.f32.mrf.mxu1  ;;  %v2276_v59 = vor.u32 %v2542_v58, %v2275_v57  ;;  %v3120_v57 = vld [vmem:[%s3630_s2] ss:$0 sm:$0xff] }
  0xd5   :  { %v427_v15 = vpack.c.bf16 %v380_v12, %v380_v12  ;;  %v372_v29 = vadd.f32 %v371_v25, %v193_v11  ;;  %v341_v12 = vadd.f32 %v340_v48, %v3070_v34  ;;  %384 = vmatpush.bf16.msrb.mxu2 %v2288_v56  ;;  %v437_v58 = vld [vmem:[#allocation2] sm:$0xff] }
  0xd7   :  { %v518_v21 = vunpack.c.l.b16 %v427_v15  ;;  %v424_v33 = vpack.c.bf16 %v372_v29, %v372_v29  ;;  %v768_v15 = vunpack.c.l.b16 %v752_v5  ;;  %v415_v18 = vmul.f32 0.17407766, %v341_v12 }
  0xd8   :  { %v342_v8 = vpop.f32.mrf.mxu0 }
  0xd9   :  { %v515_v40 = vunpack.c.l.b16 %v424_v33  ;;  %v343_v13 = vadd.f32 %v342_v8, %v3070_v34  ;;  %v746_v23 = vsel %vm739_vm1, %v415_v18, 0.0  ;;  %385 = vmatpush.bf16.msrb.mxu2 %v2276_v59  ;;  %v449_v59 = vadd.f32 %v3120_v57, %v437_v58 }
  0xda   :  { %v381_v14 = vpop.f32.mrf.mxu3  ;;  %v754_v28 = vpack.c.bf16 %v746_v23, %v746_v23 }
  0xdb   :  { %v382_v16 = vadd.f32 %v381_v14, %v193_v11  ;;  %v521_v55 = vpack.c.b16 %v515_v40, %v514_v39  ;;  %v345_v11 = vpop.f32.mrf.mxu2  ;;  %v488_v14 = vunpack.c.l.b16 %v472_v62 }
  0xdc   :  { %v346_v31 = vadd.f32 %v345_v11, %v3070_v34 }
  0xdd   :  { %v428_v19 = vpack.c.bf16 %v382_v16, %v382_v16  ;;  %v489_v16 = vunpack.c.l.b16 %v473_v6  ;;  %v2263_v6 = vld [vmem:[#allocation5 + $0x80] sm:$0xf] }
  0xde   :  { %v417_v38 = vmul.f32 0.17407766, %v346_v31 }
  0xdf   :  { %v519_v22 = vunpack.c.l.b16 %v428_v19  ;;  %v416_v19 = vmul.f32 0.17407766, %v343_v13  ;;  %v496_v20 = vpack.c.b16 %v489_v16, %v488_v14  ;;  %v2536_v16 = vld [vmem:[#allocation5 + $0x70] sm:$0xf0] }
  0xe0   :  { %v468_v48 = vsel %vm460_vm0, %v417_v38, 0.0  ;;  %v748_v49 = vsel %vm739_vm1, %v417_v38, 0.0  ;;  %v2239_v38 = vld [vmem:[#allocation5 + $0x50] sm:$0xf] }
  0xe1   :  { %v523_v24 = vpack.c.b16 %v519_v22, %v518_v21  ;;  %v776_v21 = vpack.c.b16 %v769_v17, %v768_v15  ;;  %v466_v22 = vsel %vm460_vm0, %v415_v18, 0.0  ;;  %v747_v25 = vsel %vm739_vm1, %v416_v19, 0.0  ;;  %v2251_v15 = vld [vmem:[#allocation5 + $0x68] sm:$0xf] }
  0xe2   :  { %v474_v27 = vpack.c.bf16 %v466_v22, %v466_v22  ;;  %v755_v30 = vpack.c.bf16 %v747_v25, %v747_v25  ;;  %v476_v60 = vpack.c.bf16 %v468_v48, %v468_v48  ;;  %v756_v61 = vpack.c.bf16 %v748_v49, %v748_v49  ;;  %v2215_v49 = vld [vmem:[#allocation5 + $0x20] sm:$0xf] }
  0xe3   :  { %532 = vmatpush.bf16.xpose.msrb.mxu3 %v523_v24  ;;  %788 = vmatpush.bf16.xpose.msrb.mxu1 %v523_v24  ;;  %v467_v24 = vsel %vm460_vm0, %v416_v19, 0.0  ;;  %v347_v26 = vpop.f32.mrf.mxu2  ;;  %v2252_v19 = vor.u32 %v2536_v16, %v2251_v15  ;;  %v2216_v53 = vor.u32 %v2527_v50, %v2215_v49 }
  0xe4   :  { %v475_v29 = vpack.c.bf16 %v467_v24, %v467_v24  ;;  %v490_v32 = vunpack.c.l.b16 %v474_v27  ;;  %v771_v36 = vunpack.c.l.b16 %v755_v30  ;;  %v348_v37 = vadd.f32 %v347_v26, %v3070_v34 }
  0xe5   :  { %v492_v11 = vunpack.c.l.b16 %v476_v60  ;;  %v772_v13 = vunpack.c.l.b16 %v756_v61 }
  0xe6   :  { %v491_v33 = vunpack.c.l.b16 %v475_v29  ;;  %v418_v42 = vmul.f32 0.17407766, %v348_v37 }
  0xe8   :  { %v497_v39 = vpack.c.b16 %v491_v33, %v490_v32  ;;  %v469_v54 = vsel %vm460_vm0, %v418_v42, 0.0 }
  0xe9   :  { %v477_v62 = vpack.c.bf16 %v469_v54, %v469_v54  ;;  %v2203_v54 = vld [vmem:[#allocation5 + $0x8] sm:$0xf] }
  0xeb   :  { %533 = vmatpush.bf16.xpose.msrb.mxu3 %v522_v35  ;;  %789 = vmatpush.bf16.xpose.msrb.mxu1 %v522_v35  ;;  %v770_v35 = vunpack.c.l.b16 %v754_v28  ;;  %v350_v41 = vpop.f32.mrf.mxu2  ;;  %v493_v12 = vunpack.c.l.b16 %v477_v62  ;;  %v438_v62 = vld [vmem:[#allocation2 + $0x8] sm:$0xff] }
  0xec   :  { %v351_v17 = vadd.f32 %v350_v41, %v3070_v34  ;;  %v2227_v41 = vld [vmem:[#allocation5 + $0x38] sm:$0xf] }
  0xed   :  { %v777_v40 = vpack.c.b16 %v771_v36, %v770_v35 }
  0xee   :  { %v419_v22 = vmul.f32 0.17407766, %v351_v17 }
  0xf0   :  { %v470_v24 = vsel %vm460_vm0, %v419_v22, 0.0  ;;  %v750_v25 = vsel %vm739_vm1, %v419_v22, 0.0 }
  0xf1   :  { %v478_v27 = vpack.c.bf16 %v470_v24, %v470_v24  ;;  %v758_v28 = vpack.c.bf16 %v750_v25, %v750_v25 }
  0xf3   :  { %534 = vmatpush.bf16.xpose.msrb.mxu3 %v521_v55  ;;  %790 = vmatpush.bf16.xpose.msrb.mxu1 %v521_v55  ;;  %v749_v55 = vsel %vm739_vm1, %v418_v42, 0.0  ;;  %v352_v8 = vpop.f32.mrf.mxu2  ;;  %v774_v31 = vunpack.c.l.b16 %v758_v28  ;;  %v494_v33 = vunpack.c.l.b16 %v478_v27  ;;  %v2530_v42 = vld [vmem:[#allocation5 + $0x40] sm:$0xf0] }
  0xf4   :  { %v757_v5 = vpack.c.bf16 %v749_v55, %v749_v55  ;;  %v353_v18 = vadd.f32 %v352_v8, %v3070_v34  ;;  %v2228_v48 = vor.u32 %v2530_v42, %v2227_v41  ;;  %v2524_v55 = vld [vmem:[#allocation5 + $0x10] sm:$0xf0] }
  0xf5   :  { %v2204_v56 = vor.u32 %v2524_v55, %v2203_v54  ;;  %v443_v42 = vld [vmem:[#allocation2 + $0x30] sm:$0xff] }
  0xf6   :  { %v773_v14 = vunpack.c.l.b16 %v757_v5  ;;  %v420_v23 = vmul.f32 0.17407766, %v353_v18  ;;  %v455_v49 = vadd.f32 %v3120_v57, %v443_v42 }
  0xf8   :  { %v751_v26 = vsel %vm739_vm1, %v420_v23, 0.0  ;;  %v471_v34 = vsel %vm460_vm0, %v420_v23, 0.0 }
  0xf9   :  { %v759_v29 = vpack.c.bf16 %v751_v26, %v751_v26  ;;  %v479_v30 = vpack.c.bf16 %v471_v34, %v471_v34  ;;  %v441_v34 = vld [vmem:[#allocation2 + $0x20] sm:$0xff] }
  0xfa   :  { %v453_v28 = vadd.f32 %v3120_v57, %v441_v34 }
  0xfb   :  { %535 = vmatpush.bf16.xpose.msrb.mxu3 %v520_v10  ;;  %791 = vmatpush.bf16.xpose.msrb.mxu1 %v520_v10  ;;  %v2264_v10 = vor.u32 %v2539_v7, %v2263_v6  ;;  %v775_v32 = vunpack.c.l.b16 %v759_v29  ;;  %v495_v35 = vunpack.c.l.b16 %v479_v30  ;;  %v450_v6 = vadd.f32 %v3120_v57, %v438_v62 }
  0xfd   :  { %386 = vmatpush.bf16.msrb.mxu2 %v2264_v10  ;;  %v779_v36 = vpack.c.b16 %v775_v32, %v774_v31  ;;  %v499_v37 = vpack.c.b16 %v495_v35, %v494_v33  ;;  %v442_v33 = vld [vmem:[#allocation2 + $0x28] sm:$0xff] }
 0x101   :  { %387 = vmatpush.bf16.msrb.mxu2 %v2252_v19  ;;  %v440_v19 = vld [vmem:[#allocation2 + $0x18] sm:$0xff] }
 0x102   :  { %536 = vmatmul.bf16.vlgmr.msrb.gmra.mxu3 %v496_v20  ;;  %792 = vmatmul.bf16.vlgmr.msrb.gmra.mxu1 %v776_v21  ;;  %v498_v20 = vpack.c.b16 %v493_v12, %v492_v11  ;;  %v778_v21 = vpack.c.b16 %v773_v14, %v772_v13  ;;  %v439_v12 = vld [vmem:[#allocation2 + $0x10] sm:$0xff] }
 0x103   :  { %v451_v14 = vadd.f32 %v3120_v57, %v439_v12 }
 0x112   :  { %541 = vmatmul.bf16.gmra.mxu3 %v497_v39  ;;  %797 = vmatmul.bf16.gmra.mxu1 %v777_v40  ;;  %v2533_v39 = vld [vmem:[#allocation5 + $0x58] sm:$0xf0] }
 0x113   :  { %v2240_v40 = vor.u32 %v2533_v39, %v2239_v38 }
 0x115   :  { %388 = vmatpush.bf16.msrb.mxu2 %v2240_v40 }
 0x119   :  { %389 = vmatpush.bf16.msrb.mxu2 %v2228_v48 }
 0x11d   :  { %390 = vmatpush.bf16.msrb.mxu2 %v2216_v53 }
 0x121   :  { %391 = vmatpush.bf16.msrb.mxu2 %v2204_v56  ;;  %v444_v56 = vld [vmem:[#allocation2 + $0x38] sm:$0xff] }
 0x122   :  { %546 = vmatmul.bf16.gmra.mxu3 %v498_v20  ;;  %802 = vmatmul.bf16.gmra.mxu1 %v778_v21  ;;  %v452_v21 = vadd.f32 %v3120_v57, %v440_v19 }
 0x124   :  { %392 = vmatmul.bf16.vlgmr.msrb.gmra.mxu2 %v3028_v52 }
 0x132   :  { %807 = vmatmul.bf16.gmra.mxu1 %v779_v36  ;;  %551 = vmatmul.bf16.gmra.mxu3 %v499_v37  ;;  %v454_v36 = vadd.f32 %v3120_v57, %v442_v33 }
 0x134   :  { %397 = vmatmul.bf16.gmra.mxu2 %v3060_v4 }
 0x144   :  { %402 = vmatmul.bf16.gmra.mxu2 %v3024_v51 }
 0x154   :  { %407 = vmatmul.bf16.gmra.mxu2 %v3056_v3 }
 0x17f   :  { %v793_v60 = vpop.f32.mrf.mxu1 }
 0x180   :  { %v3123_v61 = vadd.f32 %v793_v60, %v449_v59 }
 0x182   :  { %v813_v5 = vsel %vm557_vm2, %v3123_v61, -inf }
 0x183   :  { %814 = vmax.xlane.f32.xlu0 %v813_v5 }
 0x185   :  { %v537_v52 = vpop.f32.mrf.mxu3 }
 0x186   :  { %v3129_v7 = vadd.f32 %v537_v52, %v449_v59  ;;  %v456_v59 = vadd.f32 %v3120_v57, %v444_v56 }
 0x187   :  { %v795_v8 = vpop.f32.mrf.mxu1 }
 0x188   :  { %v3131_v10 = vadd.f32 %v795_v8, %v450_v6  ;;  %v558_v11 = vsel %vm557_vm2, %v3129_v7, -inf }
 0x189   :  { %559 = vmax.xlane.f32.xlu1 %v558_v11 }
 0x18a   :  { %v816_v13 = vsel %vm557_vm2, %v3131_v10, -inf }
 0x18b   :  { %817 = vmax.xlane.f32.xlu0 %v816_v13 }
 0x18d   :  { %v539_v15 = vpop.f32.mrf.mxu3 }
 0x18e   :  { %v3138_v16 = vadd.f32 %v539_v15, %v450_v6 }
 0x18f   :  { %v798_v4 = vpop.f32.mrf.mxu1 }
 0x190   :  { %v3140_v17 = vadd.f32 %v798_v4, %v451_v14  ;;  %v561_v18 = vsel %vm557_vm2, %v3138_v16, -inf }
 0x191   :  { %562 = vmax.xlane.f32.xlu1 %v561_v18 }
 0x192   :  { %v819_v20 = vsel %vm557_vm2, %v3140_v17, -inf }
 0x193   :  { %820 = vmax.xlane.f32.xlu2 %v819_v20 }
 0x195   :  { %v542_v22 = vpop.f32.mrf.mxu3 }
 0x196   :  { %v3148_v23 = vadd.f32 %v542_v22, %v451_v14 }
 0x197   :  { %v800_v24 = vpop.f32.mrf.mxu1 }
 0x198   :  { %v3150_v25 = vadd.f32 %v800_v24, %v452_v21  ;;  %v564_v26 = vsel %vm557_vm2, %v3148_v23, -inf }
 0x199   :  { %565 = vmax.xlane.f32.xlu0 %v564_v26 }
 0x19a   :  { %v822_v27 = vsel %vm557_vm2, %v3150_v25, -inf }
 0x19b   :  { %823 = vmax.xlane.f32.xlu2 %v822_v27 }
 0x19d   :  { %v544_v29 = vpop.f32.mrf.mxu3 }
 0x19e   :  { %v3157_v30 = vadd.f32 %v544_v29, %v452_v21 }
 0x19f   :  { %v803_v51 = vpop.f32.mrf.mxu1 }
 0x1a0   :  { %v3159_v31 = vadd.f32 %v803_v51, %v453_v28  ;;  %v567_v32 = vsel %vm557_vm2, %v3157_v30, -inf }
 0x1a1   :  { %568 = vmax.xlane.f32.xlu1 %v567_v32 }
 0x1a2   :  { %v825_v35 = vsel %vm557_vm2, %v3159_v31, -inf }
 0x1a3   :  { %826 = vmax.xlane.f32.xlu2 %v825_v35 }
 0x1a5   :  { %v547_v37 = vpop.f32.mrf.mxu3 }
 0x1a6   :  { %v3167_v38 = vadd.f32 %v547_v37, %v453_v28 }
 0x1a7   :  { %v805_v39 = vpop.f32.mrf.mxu1  ;;  %v3194_v13 = vpop.f32.mrf.mxu2 }
 0x1a8   :  { %v3169_v40 = vadd.f32 %v805_v39, %v454_v36  ;;  %v570_v41 = vsel %vm557_vm2, %v3167_v38, -inf }
 0x1a9   :  { %571 = vmax.xlane.f32.xlu1 %v570_v41 }
 0x1aa   :  { %v828_v48 = vsel %vm557_vm2, %v3169_v40, -inf }
 0x1ab   :  { %829 = vmax.xlane.f32.xlu0 %v828_v48 }
 0x1ad   :  { %v549_v50 = vpop.f32.mrf.mxu3 }
 0x1ae   :  { %v3176_v53 = vadd.f32 %v549_v50, %v454_v36 }
 0x1af   :  { %v808_v3 = vpop.f32.mrf.mxu1  ;;  %v3197_v18 = vpop.f32.mrf.mxu2 }
 0x1b0   :  { %v3178_v54 = vadd.f32 %v808_v3, %v455_v49  ;;  %v573_v55 = vsel %vm557_vm2, %v3176_v53, -inf }
 0x1b1   :  { %574 = vmax.xlane.f32.xlu2 %v573_v55 }
 0x1b2   :  { %v831_v58 = vsel %vm557_vm2, %v3178_v54, -inf }
 0x1b3   :  { %832 = vmax.xlane.f32.xlu0 %v831_v58 }
 0x1b5   :  { %v552_v5 = vpop.f32.mrf.mxu3 }
 0x1b6   :  { %v3189_v52 = vadd.f32 %v552_v5, %v455_v49 }
 0x1b7   :  { %v810_v60 = vpop.f32.mrf.mxu1 }
 0x1b8   :  { %v3185_v62 = vadd.f32 %v810_v60, %v456_v59  ;;  %v576_v8 = vsel %vm557_vm2, %v3189_v52, -inf }
 0x1ba   :  { %v834_v6 = vsel %vm557_vm2, %v3185_v62, -inf }
 0x1bb   :  { %835 = vmax.xlane.f32.xlu1 %v834_v6 }
 0x1bd   :  { %v554_v24 = vpop.f32.mrf.mxu3 }
 0x1be   :  { %v3205_v27 = vadd.f32 %v554_v24, %v456_v59 }
 0x1c0   :  { %v579_v33 = vsel %vm557_vm2, %v3205_v27, -inf }
 0x1c3   :  { %577 = vmax.xlane.f32.xlu1 %v576_v8 }
 0x1f6   :  { %v815_v11 = vpop.xlane.xlu0 %814 }
 0x1f7   :  { %v837_v12 = vsub.f32 %v3123_v61, %v815_v11 }
 0x1f9   :  { %v845_v57 = vmul.f32 1.442695, %v837_v12 }
 0x1fb   :  { %2637 = vpow2.f32 %v845_v57 }
 0x1fc   :  { %v560_v14 = vpop.xlane.xlu1 %559 }
 0x1fd   :  { %v582_v19 = vsub.f32 %v3129_v7, %v560_v14  ;;  %v3208_v7 = vpop.f32.mrf.mxu2 }
 0x1fe   :  { %v818_v15 = vpop.xlane.xlu0 %817 }
 0x1ff   :  { %v838_v4 = vsub.f32 %v3131_v10, %v818_v15  ;;  %v590_v61 = vmul.f32 1.442695, %v582_v19 }
 0x201   :  { %v3200_v20 = vpop.eup %2637  ;;  %v847_v21 = vmul.f32 1.442695, %v838_v4 }
 0x202   :  { %v861_v22 = vsel %vm557_vm2, %v3200_v20, 0.0 }
 0x203   :  { %2639 = vpow2.f32 %v847_v21  ;;  %862 = vadd.xlane.f32.xlu2 %v861_v22 }
 0x204   :  { %v563_v26 = vpop.xlane.xlu1 %562  ;;  %2641 = vpow2.f32 %v590_v61 }
 0x205   :  { %v583_v34 = vsub.f32 %v3138_v16, %v563_v26  ;;  %v3222_v48 = vpop.f32.mrf.mxu2 }
 0x206   :  { %v821_v10 = vpop.xlane.xlu2 %820 }
 0x207   :  { %v592_v28 = vmul.f32 1.442695, %v583_v34  ;;  %v839_v29 = vsub.f32 %v3140_v17, %v821_v10  ;;  %v194_v10 = vperm.slane %v3066_v9, 2 }
 0x209   :  { %v3210_v51 = vpop.eup %2639  ;;  %2643 = vpow2.f32 %v592_v28  ;;  %v849_v32 = vmul.f32 1.442695, %v839_v29 }
 0x20a   :  { %v864_v35 = vsel %vm557_vm2, %v3210_v51, 0.0  ;;  %v3217_v17 = vpop.eup %2641 }
 0x20b   :  { %2645 = vpow2.f32 %v849_v32  ;;  %580 = vmax.xlane.f32.xlu2 %v579_v33  ;;  %865 = vadd.xlane.f32.xlu0 %v864_v35  ;;  %v606_v55 = vsel %vm557_vm2, %v3217_v17, 0.0 }
 0x20c   :  { %v566_v16 = vpop.xlane.xlu0 %565 }
 0x20d   :  { %v584_v36 = vsub.f32 %v3148_v23, %v566_v16  ;;  %v403_v6 = vpop.f32.mrf.mxu2 }
 0x20e   :  { %v824_v37 = vpop.xlane.xlu2 %823  ;;  %v404_v9 = vadd.f32 %v403_v6, %v194_v10 }
 0x20f   :  { %v3219_v39 = vpop.eup %2643  ;;  %v594_v41 = vmul.f32 1.442695, %v584_v36  ;;  %v840_v42 = vsub.f32 %v3150_v25, %v824_v37 }
 0x210   :  { %v609_v49 = vsel %vm557_vm2, %v3219_v39, 0.0 }
 0x211   :  { %v3226_v50 = vpop.eup %2645  ;;  %2647 = vpow2.f32 %v594_v41  ;;  %v851_v3 = vmul.f32 1.442695, %v840_v42  ;;  %610 = vadd.xlane.f32.xlu1 %v609_v49 }
 0x212   :  { %v867_v23 = vsel %vm557_vm2, %v3226_v50, 0.0 }
 0x213   :  { %2649 = vpow2.f32 %v851_v3  ;;  %868 = vadd.xlane.f32.xlu2 %v867_v23  ;;  %607 = vadd.xlane.f32.xlu0 %v606_v55  ;;  %v399_v3 = vadd.f32 %v3208_v7, %v194_v10  ;;  %v401_v23 = vadd.f32 %v3222_v48, %v194_v10  ;;  %v394_v48 = vadd.f32 %v3194_v13, %v194_v10 }
 0x214   :  { %v569_v25 = vpop.xlane.xlu1 %568 }
 0x215   :  { %v585_v56 = vsub.f32 %v3157_v30, %v569_v25  ;;  %v405_v21 = vpop.f32.mrf.mxu2 }
 0x216   :  { %v827_v58 = vpop.xlane.xlu2 %826  ;;  %v406_v41 = vadd.f32 %v405_v21, %v194_v10 }
 0x217   :  { %v3233_v59 = vpop.eup %2647  ;;  %v596_v60 = vmul.f32 1.442695, %v585_v56  ;;  %v841_v5 = vsub.f32 %v3159_v31, %v827_v58  ;;  %v433_v58 = vpack.c.bf16 %v404_v9, %v404_v9 }
 0x218   :  { %v612_v8 = vsel %vm557_vm2, %v3233_v59, 0.0 }
 0x219   :  { %v3238_v11 = vpop.eup %2649  ;;  %2651 = vpow2.f32 %v596_v60  ;;  %v853_v12 = vmul.f32 1.442695, %v841_v5  ;;  %613 = vadd.xlane.f32.xlu1 %v612_v8  ;;  %v434_v60 = vpack.c.bf16 %v406_v41, %v406_v41 }
 0x21a   :  { %v870_v57 = vsel %vm557_vm2, %v3238_v11, 0.0 }
 0x21b   :  { %2653 = vpow2.f32 %v853_v12  ;;  %871 = vadd.xlane.f32.xlu0 %v870_v57 }
 0x21c   :  { %v572_v30 = vpop.xlane.xlu1 %571 }
 0x21d   :  { %v586_v14 = vsub.f32 %v3167_v38, %v572_v30  ;;  %v408_v33 = vpop.f32.mrf.mxu2  ;;  %v431_v30 = vpack.c.bf16 %v399_v3, %v399_v3 }
 0x21e   :  { %v830_v15 = vpop.xlane.xlu0 %829  ;;  %v409_v37 = vadd.f32 %v408_v33, %v194_v10 }
 0x21f   :  { %v3243_v4 = vpop.eup %2651  ;;  %v598_v31 = vmul.f32 1.442695, %v586_v14  ;;  %v842_v19 = vsub.f32 %v3169_v40, %v830_v15  ;;  %v432_v14 = vpack.c.bf16 %v401_v23, %v401_v23  ;;  %v686_v15 = vunpack.c.l.b16 %v433_v58 }
 0x220   :  { %v615_v22 = vsel %vm557_vm2, %v3243_v4, 0.0  ;;  %v435_v49 = vpack.c.bf16 %v409_v37, %v409_v37 }
 0x221   :  { %v3248_v24 = vpop.eup %2653  ;;  %2655 = vpow2.f32 %v598_v31  ;;  %v855_v61 = vmul.f32 1.442695, %v842_v19  ;;  %616 = vadd.xlane.f32.xlu2 %v615_v22  ;;  %v687_v31 = vunpack.c.l.b16 %v434_v60 }
 0x222   :  { %v873_v26 = vsel %vm557_vm2, %v3248_v24, 0.0  ;;  %v688_v57 = vunpack.c.l.b16 %v435_v49 }
 0x223   :  { %2657 = vpow2.f32 %v855_v61  ;;  %874 = vadd.xlane.f32.xlu0 %v873_v26  ;;  %v429_v61 = vpack.c.bf16 %v394_v48, %v394_v48  ;;  %v692_v13 = vpack.c.b16 %v687_v31, %v686_v15 }
 0x224   :  { %v575_v38 = vpop.xlane.xlu2 %574 }
 0x225   :  { %v587_v34 = vsub.f32 %v3176_v53, %v575_v38  ;;  %v410_v25 = vpop.f32.mrf.mxu2 }
 0x226   :  { %v833_v40 = vpop.xlane.xlu0 %832  ;;  %v411_v5 = vadd.f32 %v410_v25, %v194_v10 }
 0x227   :  { %v3254_v28 = vpop.eup %2655  ;;  %v600_v29 = vmul.f32 1.442695, %v587_v34  ;;  %v843_v32 = vsub.f32 %v3178_v54, %v833_v40  ;;  %v684_v34 = vunpack.c.l.b16 %v431_v30  ;;  %v685_v40 = vunpack.c.l.b16 %v432_v14 }
 0x228   :  { %v618_v35 = vsel %vm557_vm2, %v3254_v28, 0.0  ;;  %v436_v7 = vpack.c.bf16 %v411_v5, %v411_v5 }
 0x229   :  { %v3259_v16 = vpop.eup %2657  ;;  %2659 = vpow2.f32 %v600_v29  ;;  %v857_v36 = vmul.f32 1.442695, %v843_v32  ;;  %619 = vadd.xlane.f32.xlu2 %v618_v35  ;;  %v682_v32 = vunpack.c.l.b16 %v429_v61  ;;  %v691_v35 = vpack.c.b16 %v685_v40, %v684_v34 }
 0x22a   :  { %v876_v53 = vsel %vm557_vm2, %v3259_v16, 0.0  ;;  %v689_v19 = vunpack.c.l.b16 %v436_v7 }
 0x22b   :  { %2661 = vpow2.f32 %v857_v36  ;;  %877 = vadd.xlane.f32.xlu1 %v876_v53 }
 0x22c   :  { %v693_v22 = vpack.c.b16 %v689_v19, %v688_v57 }
 0x22e   :  { %v836_v42 = vpop.xlane.xlu1 %835  ;;  %714 = vmatpush.bf16.msrb.mxu0 %v693_v22  ;;  %945 = vmatpush.bf16.msra.mxu2 %v693_v22 }
 0x22f   :  { %v3263_v54 = vpop.eup %2659  ;;  %v844_v55 = vsub.f32 %v3185_v62, %v836_v42  ;;  %v396_v62 = vadd.f32 %v3197_v18, %v194_v10 }
 0x230   :  { %v621_v56 = vsel %vm557_vm2, %v3263_v54, 0.0 }
 0x231   :  { %v3270_v8 = vpop.eup %2661  ;;  %v859_v6 = vmul.f32 1.442695, %v844_v55  ;;  %622 = vadd.xlane.f32.xlu0 %v621_v56  ;;  %v430_v38 = vpack.c.bf16 %v396_v62, %v396_v62 }
 0x232   :  { %v879_v12 = vsel %vm557_vm2, %v3270_v8, 0.0  ;;  %715 = vmatpush.bf16.msrb.mxu0 %v692_v13  ;;  %946 = vmatpush.bf16.msra.mxu2 %v692_v13 }
 0x233   :  { %2663 = vpow2.f32 %v859_v6  ;;  %880 = vadd.xlane.f32.xlu1 %v879_v12  ;;  %v683_v33 = vunpack.c.l.b16 %v430_v38 }
 0x236   :  { %v578_v21 = vpop.xlane.xlu1 %577  ;;  %716 = vmatpush.bf16.msrb.mxu0 %v691_v35  ;;  %947 = vmatpush.bf16.msra.mxu2 %v691_v35 }
 0x237   :  { %v588_v26 = vsub.f32 %v3189_v52, %v578_v21  ;;  %v690_v52 = vpack.c.b16 %v683_v33, %v682_v32 }
 0x239   :  { %v3277_v29 = vpop.eup %2663  ;;  %v602_v18 = vmul.f32 1.442695, %v588_v26 }
 0x23a   :  { %v882_v10 = vsel %vm557_vm2, %v3277_v29, 0.0  ;;  %717 = vmatpush.bf16.msrb.mxu0 %v690_v52  ;;  %948 = vmatpush.bf16.msra.mxu2 %v690_v52 }
 0x23b   :  { %2665 = vpow2.f32 %v602_v18  ;;  %883 = vadd.xlane.f32.xlu2 %v882_v10 }
 0x241   :  { %v3281_v36 = vpop.eup %2665 }
 0x242   :  { %v624_v53 = vsel %vm557_vm2, %v3281_v36, 0.0 }
 0x243   :  { %625 = vadd.xlane.f32.xlu0 %v624_v53 }
 0x276   :  { %v863_v37 = vpop.xlane.xlu2 %862 }
 0x277   :  { %2667 = vrcp.f32 %v863_v37 }
 0x27d   :  { %v2668_v42 = vpop.eup %2667 }
 0x27e   :  { %v581_v9 = vpop.xlane.xlu2 %580  ;;  %v866_v41 = vpop.xlane.xlu0 %865  ;;  %v893_v23 = vmul.f32 %v2668_v42, %v3200_v20 }
 0x27f   :  { %v589_v49 = vsub.f32 %v3205_v27, %v581_v9  ;;  %2669 = vrcp.f32 %v866_v41 }
 0x280   :  { %v901_v56 = vpack.c.bf16 %v893_v23, %v893_v23 }
 0x281   :  { %v604_v3 = vmul.f32 1.442695, %v589_v49 }
 0x282   :  { %v917_v57 = vunpack.c.l.b16 %v901_v56 }
 0x283   :  { %2671 = vpow2.f32 %v604_v3 }
 0x284   :  { %v611_v55 = vpop.xlane.xlu1 %610 }
 0x285   :  { %v2670_v25 = vpop.eup %2669  ;;  %2673 = vrcp.f32 %v611_v55 }
 0x286   :  { %v894_v58 = vmul.f32 %v2670_v25, %v3210_v51  ;;  %v869_v60 = vpop.xlane.xlu2 %868  ;;  %v608_v5 = vpop.xlane.xlu0 %607 }
 0x287   :  { %2675 = vrcp.f32 %v608_v5 }
 0x288   :  { %v902_v6 = vpack.c.bf16 %v894_v58, %v894_v58  ;;  %2677 = vrcp.f32 %v869_v60 }
 0x289   :  { %v3288_v12 = vpop.eup %2671 }
 0x28a   :  { %v918_v27 = vunpack.c.l.b16 %v902_v6  ;;  %v627_v7 = vsel %vm557_vm2, %v3288_v12, 0.0 }
 0x28b   :  { %v2674_v20 = vpop.eup %2673  ;;  %628 = vadd.xlane.f32.xlu1 %v627_v7 }
 0x28c   :  { %v925_v48 = vpack.c.b16 %v918_v27, %v917_v57  ;;  %v639_v62 = vmul.f32 %v2674_v20, %v3219_v39  ;;  %v614_v19 = vpop.xlane.xlu1 %613 }
 0x28d   :  { %v2676_v30 = vpop.eup %2675 }
 0x28e   :  { %2293 = vmatmul.msk.bf16.vlgmr.msra.gmra.mxu2 %vm557_vm2, %v925_v48  ;;  %v872_v51 = vpop.xlane.xlu0 %871  ;;  %v2678_v14 = vpop.eup %2677  ;;  %v647_v15 = vpack.c.bf16 %v639_v62, %v639_v62  ;;  %v638_v31 = vmul.f32 %v2676_v30, %v3217_v17 }
 0x28f   :  { %2679 = vrcp.f32 %v872_v51  ;;  %v895_v22 = vmul.f32 %v2678_v14, %v3226_v50 }
 0x290   :  { %v646_v21 = vpack.c.bf16 %v638_v31, %v638_v31  ;;  %2681 = vrcp.f32 %v614_v19  ;;  %v663_v61 = vunpack.c.l.b16 %v647_v15 }
 0x291   :  { %v903_v18 = vpack.c.bf16 %v895_v22, %v895_v22 }
 0x292   :  { %v662_v26 = vunpack.c.l.b16 %v646_v21 }
 0x293   :  { %v919_v32 = vunpack.c.l.b16 %v903_v18 }
 0x294   :  { %v617_v38 = vpop.xlane.xlu2 %616  ;;  %v670_v39 = vpack.c.b16 %v663_v61, %v662_v26 }
 0x295   :  { %v2680_v34 = vpop.eup %2679  ;;  %2683 = vrcp.f32 %v617_v38  ;;  %v2553_v38 = vld [vmem:[#allocation7 + $0x38] sm:$0xff] }
 0x296   :  { %v875_v40 = vpop.xlane.xlu0 %874  ;;  %v896_v13 = vmul.f32 %v2680_v34, %v3238_v11  ;;  %2289 = vmatmul.msk.bf16.vlgmr.msrb.gmra.mxu0 %vm557_vm2, %v670_v39  ;;  %v2682_v10 = vpop.eup %2681  ;;  %1048 = vmatpush.bf16.msra.mxu3 %v2553_v38  ;;  %v2552_v34 = vld [vmem:[#allocation7 + $0x30] sm:$0xff]  ;;  %v2551_v39 = vld [vmem:[#allocation7 + $0x28] sm:$0xff] }
 0x297   :  { %2685 = vrcp.f32 %v875_v40  ;;  %v640_v50 = vmul.f32 %v2682_v10, %v3233_v59  ;;  %v2549_v40 = vld [vmem:[#allocation7 + $0x18] sm:$0xff]  ;;  %v2546_v10 = vld [vmem:[#allocation7] sm:$0xff] }
 0x298   :  { %v904_v17 = vpack.c.bf16 %v896_v13, %v896_v13  ;;  %v2547_v13 = vld [vmem:[#allocation7 + $0x8] sm:$0xff] }
 0x299   :  { %v648_v42 = vpack.c.bf16 %v640_v50, %v640_v50 }
 0x29a   :  { %v920_v33 = vunpack.c.l.b16 %v904_v17  ;;  %1049 = vmatpush.bf16.msra.mxu3 %v2552_v34 }
 0x29b   :  { %v2684_v35 = vpop.eup %2683  ;;  %v664_v23 = vunpack.c.l.b16 %v648_v42 }
 0x29c   :  { %v926_v52 = vpack.c.b16 %v920_v33, %v919_v32  ;;  %v641_v53 = vmul.f32 %v2684_v35, %v3243_v4  ;;  %v620_v11 = vpop.xlane.xlu2 %619 }
 0x29d   :  { %v2686_v41 = vpop.eup %2685 }
 0x29e   :  { %2294 = vmatmul.msk.bf16.gmra.mxu2 %vm557_vm2, %v926_v52  ;;  %v878_v37 = vpop.xlane.xlu1 %877  ;;  %v649_v9 = vpack.c.bf16 %v641_v53, %v641_v53  ;;  %v897_v3 = vmul.f32 %v2686_v41, %v3248_v24  ;;  %1050 = vmatpush.bf16.msra.mxu3 %v2551_v39 }
 0x29f   :  { %2687 = vrcp.f32 %v878_v37 }
 0x2a0   :  { %v665_v49 = vunpack.c.l.b16 %v649_v9  ;;  %2689 = vrcp.f32 %v620_v11  ;;  %v905_v58 = vpack.c.bf16 %v897_v3, %v897_v3 }
 0x2a2   :  { %v671_v59 = vpack.c.b16 %v665_v49, %v664_v23  ;;  %v921_v6 = vunpack.c.l.b16 %v905_v58 }
 0x2a4   :  { %v623_v55 = vpop.xlane.xlu0 %622 }
 0x2a5   :  { %v2688_v25 = vpop.eup %2687  ;;  %2691 = vrcp.f32 %v623_v55 }
 0x2a6   :  { %v881_v56 = vpop.xlane.xlu1 %880  ;;  %v898_v4 = vmul.f32 %v2688_v25, %v3259_v16  ;;  %2290 = vmatmul.msk.bf16.gmra.mxu0 %vm557_vm2, %v671_v59  ;;  %v2690_v60 = vpop.eup %2689 }
 0x2a7   :  { %2693 = vrcp.f32 %v881_v56  ;;  %v642_v7 = vmul.f32 %v2690_v60, %v3254_v28 }
 0x2a8   :  { %v906_v5 = vpack.c.bf16 %v898_v4, %v898_v4 }
 0x2a9   :  { %v650_v16 = vpack.c.bf16 %v642_v7, %v642_v7 }
 0x2aa   :  { %v922_v57 = vunpack.c.l.b16 %v906_v5 }
 0x2ab   :  { %v2692_v27 = vpop.eup %2691  ;;  %v666_v15 = vunpack.c.l.b16 %v650_v16 }
 0x2ac   :  { %v927_v24 = vpack.c.b16 %v922_v57, %v921_v6  ;;  %v643_v20 = vmul.f32 %v2692_v27, %v3263_v54 }
 0x2ad   :  { %v2694_v30 = vpop.eup %2693 }
 0x2ae   :  { %v884_v48 = vpop.xlane.xlu2 %883  ;;  %2295 = vmatmul.msk.bf16.gmra.mxu2 %vm557_vm2, %v927_v24  ;;  %v651_v62 = vpack.c.bf16 %v643_v20, %v643_v20  ;;  %v899_v14 = vmul.f32 %v2694_v30, %v3270_v8  ;;  %v2550_v8 = vld [vmem:[#allocation7 + $0x20] sm:$0xff] }
 0x2af   :  { %2695 = vrcp.f32 %v884_v48  ;;  %1051 = vmatpush.bf16.msra.mxu3 %v2550_v8 }
 0x2b0   :  { %v667_v51 = vunpack.c.l.b16 %v651_v62  ;;  %v907_v22 = vpack.c.bf16 %v899_v14, %v899_v14 }
 0x2b2   :  { %v672_v19 = vpack.c.b16 %v667_v51, %v666_v15  ;;  %v923_v54 = vunpack.c.l.b16 %v907_v22 }
 0x2b3   :  { %1052 = vmatpush.bf16.msra.mxu3 %v2549_v40 }
 0x2b5   :  { %v2696_v31 = vpop.eup %2695 }
 0x2b6   :  { %v900_v21 = vmul.f32 %v2696_v31, %v3277_v29  ;;  %2291 = vmatmul.msk.bf16.gmra.mxu0 %vm557_vm2, %v672_v19  ;;  %v2548_v29 = vld [vmem:[#allocation7 + $0x10] sm:$0xff]  ;;  %v626_v18 = vpop.xlane.xlu0 %625  ;;  %v132_v31 = vld [vmem:[#allocation11 + $0x2] ss:$0 sm:$0xff] }
 0x2b7   :  { %1053 = vmatpush.bf16.msra.mxu3 %v2548_v29  ;;  %2697 = vrcp.f32 %v626_v18 }
 0x2b8   :  { %v908_v28 = vpack.c.bf16 %v900_v21, %v900_v21 }
 0x2ba   :  { %v924_v61 = vunpack.c.l.b16 %v908_v28 }
 0x2bb   :  { %1054 = vmatpush.bf16.msra.mxu3 %v2547_v13 }
 0x2bc   :  { %v928_v26 = vpack.c.b16 %v924_v61, %v923_v54 }
 0x2bd   :  { %v2698_v32 = vpop.eup %2697 }
 0x2be   :  { %2296 = vmatmul.msk.bf16.gmra.mxu2 %vm557_vm2, %v928_v26  ;;  %v644_v33 = vmul.f32 %v2698_v32, %v3281_v36 }
 0x2bf   :  { %1055 = vmatpush.bf16.msra.mxu3 %v2546_v10 }
 0x2c0   :  { %v652_v52 = vpack.c.bf16 %v644_v33, %v644_v33 }
 0x2c2   :  { %v668_v37 = vunpack.c.l.b16 %v652_v52 }
 0x2fe   :  { %v629_v17 = vpop.xlane.xlu1 %628 }
 0x2ff   :  { %2699 = vrcp.f32 %v629_v17 }
 0x305   :  { %v2700_v35 = vpop.eup %2699 }
 0x306   :  { %v645_v50 = vmul.f32 %v2700_v35, %v3288_v12  ;;  %v2923_v35 = vmov 0.0  }
 0x308   :  { %v653_v53 = vpack.c.bf16 %v645_v50, %v645_v50  ;;  %v3337_v50 = vsel %vm1077_vm3, 1.0, %v2923_v35 }
 0x30a   :  { %v669_v9 = vunpack.c.l.b16 %v653_v53 }
 0x30c   :  { %v673_v41 = vpack.c.b16 %v669_v9, %v668_v37 }
 0x30e   :  { %2292 = vmatmul.msk.bf16.gmra.mxu0 %vm557_vm2, %v673_v41 }
 0x311   :  { %v950_v11 = vpop.f32.mrf.mxu2 }
 0x313   :  { %v719_v42 = vpop.f32.mrf.mxu0 }
 0x314   :  { %v972_v23 = vsel %vm460_vm0, %v719_v42, %v950_v11 }
 0x319   :  { %v952_v49 = vpop.f32.mrf.mxu2 }
 0x31b   :  { %v721_v3 = vpop.f32.mrf.mxu0 }
 0x31c   :  { %v973_v36 = vsel %vm460_vm0, %v721_v3, %v952_v49 }
 0x31d   :  { %v980_v55 = vpack.c.bf16 %v973_v36, %v972_v23 }
 0x31f   :  { %1056 = vmatmul.bf16.vlgmr.msra.gmra.mxu3 %v980_v55 }
 0x321   :  { %v955_v12 = vpop.f32.mrf.mxu2 }
 0x323   :  { %v724_v25 = vpop.f32.mrf.mxu0 }
 0x324   :  { %v974_v4 = vsel %vm460_vm0, %v724_v25, %v955_v12 }
 0x329   :  { %v957_v59 = vpop.f32.mrf.mxu2 }
 0x32b   :  { %v726_v56 = vpop.f32.mrf.mxu0 }
 0x32c   :  { %v975_v58 = vsel %vm460_vm0, %v726_v56, %v957_v59 }
 0x32d   :  { %v981_v60 = vpack.c.bf16 %v975_v58, %v974_v4 }
 0x32f   :  { %1061 = vmatmul.bf16.gmra.mxu3 %v981_v60 }
 0x331   :  { %v960_v5 = vpop.f32.mrf.mxu2 }
 0x333   :  { %v729_v6 = vpop.f32.mrf.mxu0 }
 0x334   :  { %v976_v7 = vsel %vm460_vm0, %v729_v6, %v960_v5 }
 0x339   :  { %v962_v57 = vpop.f32.mrf.mxu2 }
 0x33b   :  { %v731_v27 = vpop.f32.mrf.mxu0 }
 0x33c   :  { %v977_v24 = vsel %vm460_vm0, %v731_v27, %v962_v57 }
 0x33d   :  { %v982_v20 = vpack.c.bf16 %v977_v24, %v976_v7 }
 0x33f   :  { %1066 = vmatmul.bf16.gmra.mxu3 %v982_v20 }
 0x341   :  { %v965_v48 = vpop.f32.mrf.mxu2 }
 0x349   :  { %v967_v30 = vpop.f32.mrf.mxu2 }
 0x38b   :  { %v734_v62 = vpop.f32.mrf.mxu0 }
 0x38c   :  { %v978_v51 = vsel %vm460_vm0, %v734_v62, %v965_v48  ;;  %v2416_v48 = vld [vmem:[#allocation8 + $0xa8] sm:$0xf]  ;;  %v2576_v62 = vld [vmem:[#allocation8 + $0xb0] sm:$0xf0] }
 0x393   :  { %v736_v16 = vpop.f32.mrf.mxu0 }
 0x394   :  { %v979_v14 = vsel %vm460_vm0, %v736_v16, %v967_v30  ;;  %v2575_v30 = vld [vmem:[#allocation8 + $0xac] sm:$0xf]  ;;  %v2417_v16 = vor.u32 %v2576_v62, %v2416_v48  ;;  %v2344_v62 = vld [vmem:[#allocation8 + $0x18] sm:$0xf] }
 0x395   :  { %v983_v15 = vpack.c.bf16 %v979_v14, %v978_v51  ;;  %v2418_v51 = vld [vmem:[#allocation8 + $0xb4] sm:$0xf0]  ;;  %v2424_v14 = vld [vmem:[#allocation8 + $0xb0] sm:$0xf] }
 0x396   :  { %1443 = vmatpush.bf16.msra.mxu0 %v2417_v16  ;;  %v2557_v16 = vld [vmem:[#allocation8 + $0x1c] sm:$0xf] }
 0x397   :  { %1071 = vmatmul.bf16.gmra.mxu3 %v983_v15  ;;  %v2577_v15 = vld [vmem:[#allocation8 + $0xb8] sm:$0xf0] }
 0x3a2   :  { %v1057_v19 = vpop.f32.mrf.mxu3 }
 0x3a3   :  { %v1058_v21 = vadd.f32 %v1057_v19, %v132_v31  ;;  %v2425_v19 = vor.u32 %v2577_v15, %v2424_v14  ;;  %v2346_v15 = vld [vmem:[#allocation8 + $0x24] sm:$0xf0] }
 0x3a5   :  { %v1080_v22 = vadd.f32 %v1058_v21, %v3018_v45  ;;  %1501 = vmatpush.bf16.msrb.mxu2 %v2425_v19  ;;  %v2404_v21 = vld [vmem:[#allocation8 + $0x90] sm:$0xf]  ;;  %v2559_v19 = vld [vmem:[#allocation8 + $0x28] sm:$0xf0] }
 0x3a7   :  { %1088 = vadd.xlane.f32.xlu2 %v1080_v22 }
 0x3aa   :  { %v1059_v28 = vpop.f32.mrf.mxu3 }
 0x3ab   :  { %v1060_v54 = vadd.f32 %v1059_v28, %v132_v31  ;;  %v2572_v28 = vld [vmem:[#allocation8 + $0x94] sm:$0xf] }
 0x3ad   :  { %v1081_v61 = vadd.f32 %v1060_v54, %v3020_v46 }
 0x3af   :  { %1090 = vadd.xlane.f32.xlu0 %v1081_v61 }
 0x3b2   :  { %v1062_v26 = vpop.f32.mrf.mxu3 }
 0x3b3   :  { %v1063_v38 = vadd.f32 %v1062_v26, %v132_v31  ;;  %v2412_v26 = vld [vmem:[#allocation8 + $0x98] sm:$0xf] }
 0x3b5   :  { %v1082_v34 = vadd.f32 %v1063_v38, %v3048_v1  ;;  %v2574_v38 = vld [vmem:[#allocation8 + $0xa0] sm:$0xf0] }
 0x3b7   :  { %1092 = vadd.xlane.f32.xlu1 %v1082_v34 }
 0x3ba   :  { %v1064_v39 = vpop.f32.mrf.mxu3 }
 0x3bb   :  { %v1065_v8 = vadd.f32 %v1064_v39, %v132_v31  ;;  %v2413_v39 = vor.u32 %v2574_v38, %v2412_v26  ;;  %v2332_v26 = vld [vmem:[#allocation8] sm:$0xf]  ;;  %v2555_v38 = vld [vmem:[#allocation8 + $0x8] sm:$0xf0] }
 0x3bd   :  { %v1083_v40 = vadd.f32 %v1065_v8, %v3050_v2  ;;  %1502 = vmatpush.bf16.msrb.mxu2 %v2413_v39  ;;  %v2392_v8 = vld [vmem:[#allocation8 + $0x78] sm:$0xf]  ;;  %v2554_v39 = vld [vmem:[#allocation8 + $0x4] sm:$0xf] }
 0x3bf   :  { %1094 = vadd.xlane.f32.xlu2 %v1083_v40 }
 0x3c2   :  { %v1067_v29 = vpop.f32.mrf.mxu3 }
 0x3c3   :  { %v1068_v13 = vadd.f32 %v1067_v29, %v132_v31  ;;  %v2569_v29 = vld [vmem:[#allocation8 + $0x7c] sm:$0xf] }
 0x3c5   :  { %v1084_v45 = vadd.f32 %v1068_v13, %v3014_v43 }
 0x3c7   :  { %1096 = vadd.xlane.f32.xlu0 %v1084_v45 }
 0x3ca   :  { %v1069_v18 = vpop.f32.mrf.mxu3 }
 0x3cb   :  { %v1070_v10 = vadd.f32 %v1069_v18, %v132_v31  ;;  %v2400_v18 = vld [vmem:[#allocation8 + $0x80] sm:$0xf] }
 0x3cd   :  { %v1085_v46 = vadd.f32 %v1070_v10, %v3016_v44  ;;  %v2571_v10 = vld [vmem:[#allocation8 + $0x88] sm:$0xf0] }
 0x3cf   :  { %1098 = vadd.xlane.f32.xlu1 %v1085_v46 }
 0x41a   :  { %v1072_v17 = vpop.f32.mrf.mxu3  ;;  %v1089_v1 = vpop.xlane.xlu2 %1088 }
 0x41b   :  { %v1073_v32 = vadd.f32 %v1072_v17, %v132_v31  ;;  %v1104_v33 = vmul.f32 0.015151516, %v1089_v1  ;;  %v2401_v17 = vor.u32 %v2571_v10, %v2400_v18  ;;  %v2380_v1 = vld [vmem:[#allocation8 + $0x60] sm:$0xf]  ;;  %v2556_v18 = vld [vmem:[#allocation8 + $0x10] sm:$0xf0] }
 0x41d   :  { %v3340_v2 = vadd.f32 %v1073_v32, %v3044_v63  ;;  %v1112_v52 = vsub.f32 %v1080_v22, %v1104_v33  ;;  %v2573_v22 = vld [vmem:[#allocation8 + $0x98] sm:$0xf0]  ;;  %1503 = vmatpush.bf16.msrb.mxu2 %v2401_v17  ;;  %v2567_v32 = vld [vmem:[#allocation8 + $0x68] sm:$0xf0]  ;;  %v2566_v33 = vld [vmem:[#allocation8 + $0x64] sm:$0xf] }
 0x41e   :  { %v2405_v54 = vor.u32 %v2573_v22, %v2404_v21  ;;  %v2381_v35 = vor.u32 %v2567_v32, %v2380_v1  ;;  %v2349_v21 = vor.u32 %v2557_v16, %v2346_v15 }
 0x41f   :  { %1100 = vadd.xlane.f32.xlu2 %v3340_v2  ;;  %v3344_v43 = vmul.f32 %v3337_v50, %v1112_v52  ;;  %v2382_v52 = vld [vmem:[#allocation8 + $0x6c] sm:$0xf0] }
 0x420   :  { %1444 = vmatpush.bf16.msra.mxu0 %v2405_v54 }
 0x421   :  { %v1128_v47 = vmul.f32 %v3344_v43, %v3344_v43 }
 0x422   :  { %v1074_v44 = vpop.f32.mrf.mxu3  ;;  %v1091_v53 = vpop.xlane.xlu0 %1090 }
 0x423   :  { %v1075_v37 = vadd.f32 %v1074_v44, %v132_v31  ;;  %v1105_v9 = vmul.f32 0.015151516, %v1091_v53  ;;  %1136 = vadd.xlane.f32.xlu1 %v1128_v47  ;;  %v2421_v31 = vor.u32 %v2575_v30, %v2418_v51  ;;  %v2388_v44 = vld [vmem:[#allocation8 + $0x68] sm:$0xf]  ;;  %v2568_v47 = vld [vmem:[#allocation8 + $0x70] sm:$0xf0]  ;;  %v2385_v53 = vor.u32 %v2566_v33, %v2382_v52 }
 0x424   :  { %v2558_v30 = vld [vmem:[#allocation8 + $0x20] sm:$0xf0] }
 0x425   :  { %v3349_v41 = vadd.f32 %v1075_v37, %v3046_v0  ;;  %v1113_v11 = vsub.f32 %v1081_v61, %v1105_v9  ;;  %1472 = vmatpush.bf16.msra.mxu1 %v2421_v31  ;;  %v2406_v61 = vld [vmem:[#allocation8 + $0x9c] sm:$0xf0]  ;;  %v2389_v37 = vor.u32 %v2568_v47, %v2388_v44  ;;  %v2368_v9 = vld [vmem:[#allocation8 + $0x48] sm:$0xf]  ;;  %v2345_v14 = vor.u32 %v2558_v30, %v2344_v62 }
 0x426   :  { %v2352_v31 = vld [vmem:[#allocation8 + $0x20] sm:$0xf] }
 0x427   :  { %1102 = vadd.xlane.f32.xlu0 %v3349_v41  ;;  %v3353_v63 = vmul.f32 %v3337_v50, %v1113_v11  ;;  %1504 = vmatpush.bf16.msrb.mxu2 %v2389_v37  ;;  %v2564_v11 = vld [vmem:[#allocation8 + $0x50] sm:$0xf0]  ;;  %v2353_v22 = vor.u32 %v2559_v19, %v2352_v31 }
 0x429   :  { %v1129_v42 = vmul.f32 %v3353_v63, %v3353_v63 }
 0x42a   :  { %v1093_v49 = vpop.xlane.xlu1 %1092 }
 0x42b   :  { %v1106_v3 = vmul.f32 0.015151516, %v1093_v49  ;;  %1138 = vadd.xlane.f32.xlu2 %v1129_v42  ;;  %v2563_v42 = vld [vmem:[#allocation8 + $0x4c] sm:$0xf]  ;;  %v2369_v49 = vor.u32 %v2564_v11, %v2368_v9 }
 0x42d   :  { %v1114_v23 = vsub.f32 %v1082_v34, %v1106_v3  ;;  %v2409_v34 = vor.u32 %v2572_v28, %v2406_v61  ;;  %v2370_v3 = vld [vmem:[#allocation8 + $0x54] sm:$0xf0] }
 0x42f   :  { %v3358_v36 = vmul.f32 %v3337_v50, %v1114_v23  ;;  %1473 = vmatpush.bf16.msra.mxu1 %v2409_v34  ;;  %v2376_v23 = vld [vmem:[#allocation8 + $0x50] sm:$0xf] }
 0x431   :  { %v1130_v0 = vmul.f32 %v3358_v36, %v3358_v36 }
 0x432   :  { %v1095_v55 = vpop.xlane.xlu2 %1094 }
 0x433   :  { %v1107_v12 = vmul.f32 0.015151516, %v1095_v55  ;;  %1140 = vadd.xlane.f32.xlu0 %v1130_v0  ;;  %v2565_v0 = vld [vmem:[#allocation8 + $0x58] sm:$0xf0]  ;;  %v2373_v55 = vor.u32 %v2563_v42, %v2370_v3 }
 0x435   :  { %v1115_v25 = vsub.f32 %v1083_v40, %v1107_v12  ;;  %v2570_v40 = vld [vmem:[#allocation8 + $0x80] sm:$0xf0]  ;;  %v2377_v12 = vor.u32 %v2565_v0, %v2376_v23 }
 0x436   :  { %v2393_v13 = vor.u32 %v2570_v40, %v2392_v8  ;;  %v2334_v8 = vld [vmem:[#allocation8 + $0xc] sm:$0xf0]  ;;  %v2340_v40 = vld [vmem:[#allocation8 + $0x8] sm:$0xf] }
 0x437   :  { %v3363_v59 = vmul.f32 %v3337_v50, %v1115_v25  ;;  %1505 = vmatpush.bf16.msrb.mxu2 %v2377_v12  ;;  %v2356_v25 = vld [vmem:[#allocation8 + $0x30] sm:$0xf] }
 0x438   :  { %1445 = vmatpush.bf16.msra.mxu0 %v2393_v13 }
 0x439   :  { %v1131_v56 = vmul.f32 %v3363_v59, %v3363_v59 }
 0x43a   :  { %v1097_v4 = vpop.xlane.xlu0 %1096 }
 0x43b   :  { %v1108_v58 = vmul.f32 0.015151516, %v1097_v4  ;;  %1142 = vadd.xlane.f32.xlu1 %v1131_v56  ;;  %v2561_v56 = vld [vmem:[#allocation8 + $0x38] sm:$0xf0]  ;;  %v2560_v4 = vld [vmem:[#allocation8 + $0x34] sm:$0xf] }
 0x43c   :  { %1446 = vmatpush.bf16.msra.mxu0 %v2381_v35 }
 0x43d   :  { %v1116_v60 = vsub.f32 %v1084_v45, %v1108_v58  ;;  %v2394_v45 = vld [vmem:[#allocation8 + $0x84] sm:$0xf0]  ;;  %v2357_v58 = vor.u32 %v2561_v56, %v2356_v25 }
 0x43f   :  { %v3368_v5 = vmul.f32 %v3337_v50, %v1116_v60  ;;  %v2358_v60 = vld [vmem:[#allocation8 + $0x3c] sm:$0xf0] }
 0x440   :  { %1447 = vmatpush.bf16.msra.mxu0 %v2369_v49 }
 0x441   :  { %v1132_v6 = vmul.f32 %v3368_v5, %v3368_v5 }
 0x442   :  { %v1099_v57 = vpop.xlane.xlu1 %1098 }
 0x443   :  { %v1109_v27 = vmul.f32 0.015151516, %v1099_v57  ;;  %1144 = vadd.xlane.f32.xlu2 %v1132_v6  ;;  %v2364_v6 = vld [vmem:[#allocation8 + $0x38] sm:$0xf]  ;;  %v2562_v57 = vld [vmem:[#allocation8 + $0x40] sm:$0xf0] }
 0x444   :  { %1448 = vmatpush.bf16.msra.mxu0 %v2357_v58 }
 0x445   :  { %v1117_v7 = vsub.f32 %v1085_v46, %v1109_v27  ;;  %v2397_v46 = vor.u32 %v2569_v29, %v2394_v45  ;;  %v2337_v45 = vor.u32 %v2554_v39, %v2334_v8 }
 0x447   :  { %v3373_v24 = vmul.f32 %v3337_v50, %v1117_v7  ;;  %1474 = vmatpush.bf16.msra.mxu1 %v2397_v46  ;;  %v2361_v7 = vor.u32 %v2560_v4, %v2358_v60  ;;  %v2341_v46 = vor.u32 %v2556_v18, %v2340_v40 }
 0x448   :  { %1449 = vmatpush.bf16.msra.mxu0 %v2345_v14  ;;  %v3394_v14 = vld [vmem:[#allocation11 + $0x4] ss:$0 sm:$0xff] }
 0x449   :  { %v1133_v20 = vmul.f32 %v3373_v24, %v3373_v24 }
 0x44b   :  { %1146 = vadd.xlane.f32.xlu0 %v1133_v20  ;;  %1475 = vmatpush.bf16.msra.mxu1 %v2385_v53  ;;  %v2365_v20 = vor.u32 %v2562_v57, %v2364_v6 }
 0x44d   :  { %1506 = vmatpush.bf16.msrb.mxu2 %v2365_v20 }
 0x44f   :  { %1476 = vmatpush.bf16.msra.mxu1 %v2373_v55 }
 0x451   :  { %1507 = vmatpush.bf16.msrb.mxu2 %v2353_v22 }
 0x453   :  { %1477 = vmatpush.bf16.msra.mxu1 %v2361_v7  ;;  %v3390_v7 = vld [vmem:[#allocation11 + $0x3] ss:$0 sm:$0xff] }
 0x455   :  { %1508 = vmatpush.bf16.msrb.mxu2 %v2341_v46 }
 0x457   :  { %1478 = vmatpush.bf16.msra.mxu1 %v2349_v21 }
 0x45b   :  { %1479 = vmatpush.bf16.msra.mxu1 %v2337_v45 }
 0x492   :  { %v1101_v27 = vpop.xlane.xlu2 %1100 }
 0x493   :  { %v1110_v48 = vmul.f32 0.015151516, %v1101_v27 }
 0x495   :  { %v1118_v51 = vsub.f32 %v3340_v2, %v1110_v48  ;;  %v2333_v2 = vor.u32 %v2555_v38, %v2332_v26 }
 0x496   :  { %v1137_v28 = vpop.xlane.xlu1 %1136 }
 0x497   :  { %v3379_v54 = vmul.f32 %v3337_v50, %v1118_v51  ;;  %v1152_v61 = vmul.f32 0.015151516, %v1137_v28  ;;  %1450 = vmatpush.bf16.msra.mxu0 %v2333_v2 }
 0x499   :  { %v1134_v34 = vmul.f32 %v3379_v54, %v3379_v54  ;;  %v1160_v29 = vadd.f32 1e-05, %v1152_v61 }
 0x49a   :  { %v1103_v13 = vpop.xlane.xlu0 %1102 }
 0x49b   :  { %v1111_v10 = vmul.f32 0.015151516, %v1103_v13  ;;  %1148 = vadd.xlane.f32.xlu1 %v1134_v34  ;;  %2701 = vrsqrt.f32 %v1160_v29  ;;  %vm1174_vm5 = vweird.f32 %v1160_v29 }
 0x49d   :  { %v1119_v17 = vsub.f32 %v3349_v41, %v1111_v10 }
 0x49e   :  { %v1139_v1 = vpop.xlane.xlu2 %1138 }
 0x49f   :  { %v3385_v32 = vmul.f32 %v3337_v50, %v1119_v17  ;;  %v1153_v33 = vmul.f32 0.015151516, %v1139_v1 }
 0x4a1   :  { %v1135_v35 = vmul.f32 %v3385_v32, %v3385_v32  ;;  %v2702_v52 = vpop.eup %2701  ;;  %v1161_v44 = vadd.f32 1e-05, %v1153_v33 }
 0x4a2   :  { %v1169_v47 = vmul.f32 %v2702_v52, %v1160_v29  ;;  %vm1175_vm4 = vweird.f32 %v2702_v52 }
 0x4a3   :  { %1150 = vadd.xlane.f32.xlu2 %v1135_v35  ;;  %2703 = vrsqrt.f32 %v1161_v44  ;;  %vm1176_vm6 = vmor %vm1174_vm5, %vm1175_vm4  ;;  %vm1184_vm8 = vweird.f32 %v1161_v44 }
 0x4a4   :  { %v1170_v53 = vmul.f32 %v2702_v52, %v1169_v47 }
 0x4a6   :  { %v1171_v37 = vmul.f32 0.5, %v1170_v53  ;;  %v1141_v9 = vpop.xlane.xlu0 %1140 }
 0x4a7   :  { %v1154_v11 = vmul.f32 0.015151516, %v1141_v9 }
 0x4a8   :  { %v1172_v42 = vsub.f32 1.5, %v1171_v37 }
 0x4a9   :  { %v2704_v41 = vpop.eup %2703  ;;  %v1162_v49 = vadd.f32 1e-05, %v1154_v11 }
 0x4aa   :  { %v1173_v3 = vmul.f32 %v2702_v52, %v1172_v42  ;;  %v1179_v23 = vmul.f32 %v2704_v41, %v1161_v44  ;;  %vm1185_vm7 = vweird.f32 %v2704_v41 }
 0x4ab   :  { %2705 = vrsqrt.f32 %v1162_v49  ;;  %vm1186_vm9 = vmor %vm1184_vm8, %vm1185_vm7  ;;  %vm1194_vm11 = vweird.f32 %v1162_v49 }
 0x4ac   :  { %v1180_v0 = vmul.f32 %v2704_v41, %v1179_v23  ;;  %v1177_v55 = vsel %vm1176_vm6, %v2702_v52, %v1173_v3 }
 0x4ad   :  { %v1248_v60 = vmul.f32 %v1177_v55, %v3344_v43 }
 0x4ae   :  { %v1181_v12 = vmul.f32 0.5, %v1180_v0  ;;  %v1143_v25 = vpop.xlane.xlu1 %1142 }
 0x4af   :  { %v1155_v56 = vmul.f32 0.015151516, %v1143_v25  ;;  %v1256_v30 = vmul.f32 %v1248_v60, %v3390_v7  ;;  %v2593_v60 = vld [vmem:[#allocation10 + $0x78] sm:$0xff] }
 0x4b0   :  { %v1182_v4 = vsub.f32 1.5, %v1181_v12  ;;  %1787 = vmatpush.bf16.msrb.mxu0 %v2593_v60 }
 0x4b1   :  { %v2706_v58 = vpop.eup %2705  ;;  %v1163_v6 = vadd.f32 1e-05, %v1155_v56  ;;  %v3398_v22 = vadd.f32 %v1256_v30, %v3394_v14  ;;  %v2591_v30 = vld [vmem:[#allocation10 + $0x68] sm:$0xff] }
 0x4b2   :  { %v1183_v57 = vmul.f32 %v2704_v41, %v1182_v4  ;;  %v1189_v27 = vmul.f32 %v2706_v58, %v1162_v49  ;;  %vm1195_vm10 = vweird.f32 %v2706_v58 }
 0x4b3   :  { %2707 = vrsqrt.f32 %v1163_v6  ;;  %vm1196_vm12 = vmor %vm1194_vm11, %vm1195_vm10  ;;  %vm1204_vm14 = vweird.f32 %v1163_v6 }
 0x4b4   :  { %v1187_v20 = vsel %vm1186_vm9, %v2704_v41, %v1183_v57  ;;  %v1190_v48 = vmul.f32 %v2706_v58, %v1189_v27  ;;  %v2601_v57 = vld [vmem:[#allocation10 + $0xb8] sm:$0xff] }
 0x4b5   :  { %v1249_v62 = vmul.f32 %v1187_v20, %v3353_v63  ;;  %1816 = vmatpush.bf16.msrb.mxu1 %v2601_v57 }
 0x4b6   :  { %v1191_v16 = vmul.f32 0.5, %v1190_v48  ;;  %v1145_v51 = vpop.xlane.xlu2 %1144  ;;  %v2600_v48 = vld [vmem:[#allocation10 + $0xb0] sm:$0xff] }
 0x4b7   :  { %v1156_v15 = vmul.f32 0.015151516, %v1145_v51  ;;  %v1257_v43 = vmul.f32 %v1249_v62, %v3390_v7  ;;  %v2583_v62 = vld [vmem:[#allocation10 + $0x28] sm:$0xff] }
 0x4b8   :  { %v1192_v31 = vsub.f32 1.5, %v1191_v16 }
 0x4b9   :  { %v2708_v19 = vpop.eup %2707  ;;  %v1164_v21 = vadd.f32 1e-05, %v1156_v15  ;;  %v3401_v28 = vadd.f32 %v1257_v43, %v3394_v14  ;;  %1817 = vmatpush.bf16.msrb.mxu1 %v2600_v48  ;;  %v2582_v15 = vld [vmem:[#allocation10 + $0x20] sm:$0xff] }
 0x4ba   :  { %v1193_v61 = vmul.f32 %v2706_v58, %v1192_v31  ;;  %v1199_v63 = vmul.f32 %v2708_v19, %v1163_v6  ;;  %vm1205_vm13 = vweird.f32 %v2708_v19  ;;  %v2592_v6 = vld [vmem:[#allocation10 + $0x70] sm:$0xff]  ;;  %v2590_v43 = vld [vmem:[#allocation10 + $0x60] sm:$0xff]  ;;  %v2599_v31 = vld [vmem:[#allocation10 + $0xa8] sm:$0xff] }
 0x4bb   :  { %2709 = vrsqrt.f32 %v1164_v21  ;;  %v1272_v26 = vpack.c.bf16 %v3401_v28, %v3398_v22  ;;  %vm1206_vm15 = vmor %vm1204_vm14, %vm1205_vm13  ;;  %vm1214_vm1 = vweird.f32 %v1164_v21  ;;  %1788 = vmatpush.bf16.msrb.mxu0 %v2592_v6 }
 0x4bc   :  { %v1200_v38 = vmul.f32 %v2708_v19, %v1199_v63  ;;  %v1197_v34 = vsel %vm1196_vm12, %v2706_v58, %v1193_v61 }
 0x4bd   :  { %1451 = vmatmul.bf16.vlgmr.msra.gmra.mxu0 %v1272_v26  ;;  %1480 = vmatmul.bf16.vlgmr.msra.gmra.mxu1 %v1272_v26  ;;  %v1250_v13 = vmul.f32 %v1197_v34, %v3358_v36 }
 0x4be   :  { %v1201_v2 = vmul.f32 0.5, %v1200_v38  ;;  %1509 = vmatmul.bf16.vlgmr.msrb.gmra.mxu2 %v1272_v26  ;;  %v1147_v39 = vpop.xlane.xlu0 %1146  ;;  %1818 = vmatpush.bf16.msrb.mxu1 %v2599_v31  ;;  %v2581_v26 = vld [vmem:[#allocation10 + $0x18] sm:$0xff] }
 0x4bf   :  { %v1157_v8 = vmul.f32 0.015151516, %v1147_v39  ;;  %v1258_v33 = vmul.f32 %v1250_v13, %v3390_v7  ;;  %1789 = vmatpush.bf16.msrb.mxu0 %v2591_v30  ;;  %v2589_v38 = vld [vmem:[#allocation10 + $0x58] sm:$0xff] }
 0x4c0   :  { %v1202_v40 = vsub.f32 1.5, %v1201_v2  ;;  %v2598_v2 = vld [vmem:[#allocation10 + $0xa0] sm:$0xff]  ;;  %v2597_v13 = vld [vmem:[#allocation10 + $0x98] sm:$0xff] }
 0x4c1   :  { %v2710_v29 = vpop.eup %2709  ;;  %v1165_v45 = vadd.f32 1e-05, %v1157_v8  ;;  %v3410_v53 = vadd.f32 %v1258_v33, %v3394_v14  ;;  %v2580_v8 = vld [vmem:[#allocation10 + $0x10] sm:$0xff] }
 0x4c2   :  { %v1203_v18 = vmul.f32 %v2708_v19, %v1202_v40  ;;  %v1209_v10 = vmul.f32 %v2710_v29, %v1164_v21  ;;  %vm1215_vm0 = vweird.f32 %v2710_v29  ;;  %1819 = vmatpush.bf16.msrb.mxu1 %v2598_v2  ;;  %v2588_v40 = vld [vmem:[#allocation10 + $0x50] sm:$0xff] }
 0x4c3   :  { %2711 = vrsqrt.f32 %v1165_v45  ;;  %vm1216_vm2 = vmor %vm1214_vm1, %vm1215_vm0  ;;  %vm1224_vm4 = vweird.f32 %v1165_v45  ;;  %1790 = vmatpush.bf16.msrb.mxu0 %v2590_v43  ;;  %v2596_v33 = vld [vmem:[#allocation10 + $0x90] sm:$0xff] }
 0x4c4   :  { %v1207_v46 = vsel %vm1206_vm15, %v2708_v19, %v1203_v18  ;;  %v1210_v17 = vmul.f32 %v2710_v29, %v1209_v10 }
 0x4c5   :  { %v1251_v1 = vmul.f32 %v1207_v46, %v3363_v59  ;;  %v2579_v46 = vld [vmem:[#allocation10 + $0x8] sm:$0xff] }
 0x4c6   :  { %v1211_v35 = vmul.f32 0.5, %v1210_v17  ;;  %1820 = vmatpush.bf16.msrb.mxu1 %v2597_v13  ;;  %v2587_v17 = vld [vmem:[#allocation10 + $0x48] sm:$0xff] }
 0x4c7   :  { %v1259_v52 = vmul.f32 %v1251_v1, %v3390_v7  ;;  %1791 = vmatpush.bf16.msrb.mxu0 %v2589_v38 }
 0x4c8   :  { %v1212_v44 = vsub.f32 1.5, %v1211_v35 }
 0x4c9   :  { %v2712_v47 = vpop.eup %2711  ;;  %v3413_v36 = vadd.f32 %v1259_v52, %v3394_v14 }
 0x4ca   :  { %v1213_v37 = vmul.f32 %v2710_v29, %v1212_v44  ;;  %v1219_v9 = vmul.f32 %v2712_v47, %v1165_v45  ;;  %vm1225_vm3 = vweird.f32 %v2712_v47  ;;  %1821 = vmatpush.bf16.msrb.mxu1 %v2596_v33  ;;  %v2578_v44 = vld [vmem:[#allocation10] sm:$0xff] }
 0x4cb   :  { %v1273_v11 = vpack.c.bf16 %v3413_v36, %v3410_v53  ;;  %vm1226_vm5 = vmor %vm1224_vm4, %vm1225_vm3  ;;  %1792 = vmatpush.bf16.msrb.mxu0 %v2588_v40 }
 0x4cc   :  { %v1220_v59 = vmul.f32 %v2712_v47, %v1219_v9  ;;  %v1217_v42 = vsel %vm1216_vm2, %v2710_v29, %v1213_v37  ;;  %v2595_v9 = vld [vmem:[#allocation10 + $0x88] sm:$0xff] }
 0x4cd   :  { %1456 = vmatmul.bf16.gmra.mxu0 %v1273_v11  ;;  %1485 = vmatmul.bf16.gmra.mxu1 %v1273_v11  ;;  %v1252_v3 = vmul.f32 %v1217_v42, %v3368_v5  ;;  %v2585_v5 = vld [vmem:[#allocation10 + $0x38] sm:$0xff] }
 0x4ce   :  { %v1221_v41 = vmul.f32 0.5, %v1220_v59  ;;  %1514 = vmatmul.bf16.gmra.mxu2 %v1273_v11  ;;  %1758 = vmatpush.bf16.msrb.mxu3 %v2585_v5 }
 0x4cf   :  { %v1260_v12 = vmul.f32 %v1252_v3, %v3390_v7  ;;  %1793 = vmatpush.bf16.msrb.mxu0 %v2587_v17  ;;  %1822 = vmatpush.bf16.msrb.mxu1 %v2595_v9 }
 0x4d0   :  { %v1222_v49 = vsub.f32 1.5, %v1221_v41  ;;  %v2594_v41 = vld [vmem:[#allocation10 + $0x80] sm:$0xff] }
 0x4d1   :  { %v3422_v56 = vadd.f32 %v1260_v12, %v3394_v14  ;;  %v131_v12 = vld [vmem:[#allocation11 + $0x1] ss:$8 sm:$0x7] }
 0x4d2   :  { %v1223_v23 = vmul.f32 %v2712_v47, %v1222_v49  ;;  %v3443_v5 = vperm.slane %v131_v12, 1 }
 0x4d3   :  { %1823 = vmatpush.bf16.msrb.mxu1 %v2594_v41 }
 0x4d4   :  { %v1227_v0 = vsel %vm1226_vm5, %v2712_v47, %v1223_v23  ;;  %v2586_v47 = vld [vmem:[#allocation10 + $0x40] sm:$0xff] }
 0x4d5   :  { %v1253_v55 = vmul.f32 %v1227_v0, %v3373_v24  ;;  %v2584_v24 = vld [vmem:[#allocation10 + $0x30] sm:$0xff]  ;;  %1794 = vmatpush.bf16.msrb.mxu0 %v2586_v47 }
 0x4d6   :  { %1759 = vmatpush.bf16.msrb.mxu3 %v2584_v24 }
 0x4d7   :  { %v1261_v25 = vmul.f32 %v1253_v55, %v3390_v7 }
 0x4d9   :  { %v3425_v4 = vadd.f32 %v1261_v25, %v3394_v14 }
 0x4da   :  { %1760 = vmatpush.bf16.msrb.mxu3 %v2583_v62 }
 0x4db   :  { %v1274_v58 = vpack.c.bf16 %v3425_v4, %v3422_v56 }
 0x4dd   :  { %1461 = vmatmul.bf16.gmra.mxu0 %v1274_v58  ;;  %1490 = vmatmul.bf16.gmra.mxu1 %v1274_v58 }
 0x4de   :  { %1519 = vmatmul.bf16.gmra.mxu2 %v1274_v58  ;;  %1761 = vmatpush.bf16.msrb.mxu3 %v2582_v15  ;;  %v3441_v58 = vperm.slane %v131_v12, 0 }
 0x4e2   :  { %1762 = vmatpush.bf16.msrb.mxu3 %v2581_v26 }
 0x4e6   :  { %1763 = vmatpush.bf16.msrb.mxu3 %v2580_v8 }
 0x4ea   :  { %1764 = vmatpush.bf16.msrb.mxu3 %v2579_v46 }
 0x4ee   :  { %1765 = vmatpush.bf16.msrb.mxu3 %v2578_v44 }
 0x50e   :  { %v1149_v27 = vpop.xlane.xlu1 %1148 }
 0x50f   :  { %v1158_v20 = vmul.f32 0.015151516, %v1149_v27 }
 0x511   :  { %v1166_v16 = vadd.f32 1e-05, %v1158_v20  ;;  %v3449_v20 = vperm.slane %v131_v12, 2 }
 0x513   :  { %2713 = vrsqrt.f32 %v1166_v16  ;;  %vm1234_vm7 = vweird.f32 %v1166_v16 }
 0x516   :  { %v1151_v51 = vpop.xlane.xlu2 %1150 }
 0x517   :  { %v1159_v19 = vmul.f32 0.015151516, %v1151_v51 }
 0x519   :  { %v2714_v21 = vpop.eup %2713  ;;  %v1167_v61 = vadd.f32 1e-05, %v1159_v19 }
 0x51a   :  { %v1229_v63 = vmul.f32 %v2714_v21, %v1166_v16  ;;  %vm1235_vm6 = vweird.f32 %v2714_v21 }
 0x51b   :  { %2715 = vrsqrt.f32 %v1167_v61  ;;  %vm1236_vm8 = vmor %vm1234_vm7, %vm1235_vm6  ;;  %vm1244_vm10 = vweird.f32 %v1167_v61 }
 0x51c   :  { %v1230_v34 = vmul.f32 %v2714_v21, %v1229_v63 }
 0x51e   :  { %v1231_v39 = vmul.f32 0.5, %v1230_v34 }
 0x520   :  { %v1232_v29 = vsub.f32 1.5, %v1231_v39 }
 0x521   :  { %v2716_v45 = vpop.eup %2715 }
 0x522   :  { %v1233_v18 = vmul.f32 %v2714_v21, %v1232_v29  ;;  %v1239_v10 = vmul.f32 %v2716_v45, %v1167_v61  ;;  %vm1245_vm9 = vweird.f32 %v2716_v45 }
 0x523   :  { %vm1246_vm11 = vmor %vm1244_vm10, %vm1245_vm9 }
 0x524   :  { %v1240_v1 = vmul.f32 %v2716_v45, %v1239_v10  ;;  %v1237_v35 = vsel %vm1236_vm8, %v2714_v21, %v1233_v18 }
 0x525   :  { %v1254_v11 = vmul.f32 %v1237_v35, %v3379_v54 }
 0x526   :  { %v1241_v52 = vmul.f32 0.5, %v1240_v1 }
 0x527   :  { %v1262_v3 = vmul.f32 %v1254_v11, %v3390_v7 }
 0x528   :  { %v1242_v37 = vsub.f32 1.5, %v1241_v52 }
 0x529   :  { %v3434_v0 = vadd.f32 %v1262_v3, %v3394_v14 }
 0x52a   :  { %v1243_v59 = vmul.f32 %v2716_v45, %v1242_v37 }
 0x52c   :  { %v1247_v42 = vsel %vm1246_vm11, %v2716_v45, %v1243_v59 }
 0x52d   :  { %v1255_v49 = vmul.f32 %v1247_v42, %v3385_v32 }
 0x52f   :  { %v1263_v23 = vmul.f32 %v1255_v49, %v3390_v7 }
 0x531   :  { %v3437_v55 = vadd.f32 %v1263_v23, %v3394_v14 }
 0x533   :  { %v1275_v54 = vpack.c.bf16 %v3437_v55, %v3434_v0 }
 0x535   :  { %1466 = vmatmul.bf16.gmra.mxu0 %v1275_v54  ;;  %1495 = vmatmul.bf16.gmra.mxu1 %v1275_v54 }
 0x536   :  { %1524 = vmatmul.bf16.gmra.mxu2 %v1275_v54 }
 0x53a   :  { %v1452_v25 = vpop.f32.mrf.mxu0  ;;  %v1481_v32 = vpop.f32.mrf.mxu1 }
 0x53b   :  { %v1453_v7 = vadd.f32 %v1452_v25, %v3441_v58  ;;  %v1482_v60 = vadd.f32 %v1481_v32, %v3443_v5 }
 0x53d   :  { %v1530_v48 = vmax.f32 %v1453_v7, 0.0  ;;  %v1531_v62 = vmax.f32 %v1482_v60, 0.0 }
 0x541   :  { %v1510_v24 = vpop.f32.mrf.mxu2 }
 0x542   :  { %v1454_v14 = vpop.f32.mrf.mxu0  ;;  %v1483_v6 = vpop.f32.mrf.mxu1  ;;  %v1511_v43 = vadd.f32 %v1510_v24, %v3449_v20 }
 0x543   :  { %v1455_v57 = vadd.f32 %v1454_v14, %v3441_v58  ;;  %v1484_v27 = vadd.f32 %v1483_v6, %v3443_v5 }
 0x544   :  { %v1532_v63 = vmax.f32 %v1511_v43, 0.0 }
 0x545   :  { %v1533_v30 = vmax.f32 %v1455_v57, 0.0  ;;  %v1534_v16 = vmax.f32 %v1484_v27, 0.0 }
 0x547   :  { %v1554_v51 = vpack.c.bf16 %v1533_v30, %v1530_v48  ;;  %v1555_v15 = vpack.c.bf16 %v1534_v16, %v1531_v62 }
 0x549   :  { %v1512_v31 = vpop.f32.mrf.mxu2  ;;  %1766 = vmatmul.bf16.vlgmr.msrb.gmra.mxu3 %v1554_v51  ;;  %1795 = vmatmul.bf16.vlgmr.msrb.gmra.mxu0 %v1555_v15 }
 0x54a   :  { %v1513_v19 = vadd.f32 %v1512_v31, %v3449_v20  ;;  %v1457_v21 = vpop.f32.mrf.mxu0  ;;  %v1486_v61 = vpop.f32.mrf.mxu1 }
 0x54b   :  { %v1458_v34 = vadd.f32 %v1457_v21, %v3441_v58  ;;  %v1487_v2 = vadd.f32 %v1486_v61, %v3443_v5 }
 0x54c   :  { %v1535_v26 = vmax.f32 %v1513_v19, 0.0 }
 0x54d   :  { %v1536_v45 = vmax.f32 %v1458_v34, 0.0  ;;  %v1537_v18 = vmax.f32 %v1487_v2, 0.0 }
 0x54e   :  { %v1556_v38 = vpack.c.bf16 %v1535_v26, %v1532_v63 }
 0x550   :  { %1824 = vmatmul.bf16.vlgmr.msrb.gmra.mxu1 %v1556_v38 }
 0x551   :  { %v1515_v39 = vpop.f32.mrf.mxu2 }
 0x552   :  { %v1459_v8 = vpop.f32.mrf.mxu0  ;;  %v1488_v40 = vpop.f32.mrf.mxu1  ;;  %v1516_v33 = vadd.f32 %v1515_v39, %v3449_v20 }
 0x553   :  { %v1460_v29 = vadd.f32 %v1459_v8, %v3441_v58  ;;  %v1489_v13 = vadd.f32 %v1488_v40, %v3443_v5 }
 0x554   :  { %v1538_v37 = vmax.f32 %v1516_v33, 0.0 }
 0x555   :  { %v1539_v10 = vmax.f32 %v1460_v29, 0.0  ;;  %v1540_v46 = vmax.f32 %v1489_v13, 0.0 }
 0x557   :  { %v1557_v17 = vpack.c.bf16 %v1539_v10, %v1536_v45  ;;  %v1558_v1 = vpack.c.bf16 %v1540_v46, %v1537_v18 }
 0x559   :  { %v1517_v35 = vpop.f32.mrf.mxu2  ;;  %1771 = vmatmul.bf16.gmra.mxu3 %v1557_v17  ;;  %1800 = vmatmul.bf16.gmra.mxu0 %v1558_v1 }
 0x55a   :  { %v1518_v52 = vadd.f32 %v1517_v35, %v3449_v20  ;;  %v1462_v44 = vpop.f32.mrf.mxu0  ;;  %v1491_v47 = vpop.f32.mrf.mxu1 }
 0x55b   :  { %v1463_v59 = vadd.f32 %v1462_v44, %v3441_v58  ;;  %v1492_v42 = vadd.f32 %v1491_v47, %v3443_v5 }
 0x55c   :  { %v1541_v9 = vmax.f32 %v1518_v52, 0.0 }
 0x55d   :  { %v1542_v12 = vmax.f32 %v1463_v59, 0.0  ;;  %v1543_v25 = vmax.f32 %v1492_v42, 0.0 }
 0x55e   :  { %v1559_v11 = vpack.c.bf16 %v1541_v9, %v1538_v37 }
 0x560   :  { %1829 = vmatmul.bf16.gmra.mxu1 %v1559_v11 }
 0x561   :  { %v1520_v41 = vpop.f32.mrf.mxu2 }
 0x562   :  { %v1464_v49 = vpop.f32.mrf.mxu0  ;;  %v1493_v3 = vpop.f32.mrf.mxu1  ;;  %v1521_v14 = vadd.f32 %v1520_v41, %v3449_v20 }
 0x563   :  { %v1465_v23 = vadd.f32 %v1464_v49, %v3441_v58  ;;  %v1494_v54 = vadd.f32 %v1493_v3, %v3443_v5  ;;  %v2924_v3 = vmov 0  }
 0x564   :  { %v1544_v27 = vmax.f32 %v1521_v14, 0.0  ;;  %2634 = vset.pattern.permute.xlu2 %v2924_v3  ;;  %2633 = vset.pattern.permute.xlu1 %v2924_v3 }
 0x565   :  { %v1545_v32 = vmax.f32 %v1465_v23, 0.0  ;;  %v1546_v7 = vmax.f32 %v1494_v54, 0.0  ;;  %2635 = vset.pattern.permute.xlu0 %v2924_v3 }
 0x567   :  { %v1560_v60 = vpack.c.bf16 %v1545_v32, %v1542_v12  ;;  %v1561_v24 = vpack.c.bf16 %v1546_v7, %v1543_v25 }
 0x569   :  { %v1522_v6 = vpop.f32.mrf.mxu2  ;;  %1776 = vmatmul.bf16.gmra.mxu3 %v1560_v60  ;;  %1805 = vmatmul.bf16.gmra.mxu0 %v1561_v24 }
 0x56a   :  { %v1523_v57 = vadd.f32 %v1522_v6, %v3449_v20 }
 0x56c   :  { %v1547_v48 = vmax.f32 %v1523_v57, 0.0 }
 0x56e   :  { %v1562_v62 = vpack.c.bf16 %v1547_v48, %v1544_v27 }
 0x570   :  { %1834 = vmatmul.bf16.gmra.mxu1 %v1562_v62 }
 0x5b2   :  { %v1467_v30 = vpop.f32.mrf.mxu0  ;;  %v1496_v16 = vpop.f32.mrf.mxu1 }
 0x5b3   :  { %v1468_v51 = vadd.f32 %v1467_v30, %v3441_v58  ;;  %v1497_v15 = vadd.f32 %v1496_v16, %v3443_v5 }
 0x5b5   :  { %v1548_v63 = vmax.f32 %v1468_v51, 0.0  ;;  %v1549_v26 = vmax.f32 %v1497_v15, 0.0 }
 0x5b9   :  { %v1525_v43 = vpop.f32.mrf.mxu2 }
 0x5ba   :  { %v1469_v31 = vpop.f32.mrf.mxu0  ;;  %v1498_v19 = vpop.f32.mrf.mxu1  ;;  %v1526_v8 = vadd.f32 %v1525_v43, %v3449_v20 }
 0x5bb   :  { %v1470_v21 = vadd.f32 %v1469_v31, %v3441_v58  ;;  %v1499_v61 = vadd.f32 %v1498_v19, %v3443_v5  ;;  %v3471_v58 = vld [vmem:[#allocation11 + $0x5] ss:$0 sm:$0xff]  ;;  %v2038_v19 = vld [vmem:[%s3629_s1 + $0x8] sm:$0xff] }
 0x5bc   :  { %v1550_v13 = vmax.f32 %v1526_v8, 0.0 }
 0x5bd   :  { %v1551_v38 = vmax.f32 %v1470_v21, 0.0  ;;  %v1552_v34 = vmax.f32 %v1499_v61, 0.0 }
 0x5bf   :  { %v1563_v2 = vpack.c.bf16 %v1551_v38, %v1548_v63  ;;  %v1564_v39 = vpack.c.bf16 %v1552_v34, %v1549_v26 }
 0x5c1   :  { %v1527_v40 = vpop.f32.mrf.mxu2  ;;  %1781 = vmatmul.bf16.gmra.mxu3 %v1563_v2  ;;  %1810 = vmatmul.bf16.gmra.mxu0 %v1564_v39 }
 0x5c2   :  { %v1528_v29 = vadd.f32 %v1527_v40, %v3449_v20 }
 0x5c4   :  { %v1553_v45 = vmax.f32 %v1528_v29, 0.0 }
 0x5c6   :  { %v1565_v18 = vpack.c.bf16 %v1553_v45, %v1550_v13  ;;  %v1796_v10 = vpop.f32.mrf.mxu0 }
 0x5c8   :  { %1839 = vmatmul.bf16.gmra.mxu1 %v1565_v18 }
 0x5cc   :  { %v1767_v5 = vpop.f32.mrf.mxu3 }
 0x5cd   :  { %v1768_v46 = vadd.f32 %v1767_v5, %v3471_v58  ;;  %v1825_v17 = vpop.f32.mrf.mxu1 }
 0x5ce   :  { %v1798_v1 = vpop.f32.mrf.mxu0 }
 0x5cf   :  { %v1797_v33 = vadd.f32 %v1796_v10, %v1768_v46 }
 0x5d1   :  { %v1826_v35 = vadd.f32 %v1825_v17, %v1797_v33 }
 0x5d3   :  { %v1845_v52 = vadd.f32 %v1826_v35, %v3398_v22 }
 0x5d4   :  { %v1769_v44 = vpop.f32.mrf.mxu3 }
 0x5d5   :  { %v1770_v47 = vadd.f32 %v1769_v44, %v3471_v58  ;;  %v1827_v20 = vpop.f32.mrf.mxu1  ;;  %1853 = vadd.xlane.f32.xlu0 %v1845_v52 }
 0x5d6   :  { %v1801_v9 = vpop.f32.mrf.mxu0 }
 0x5d7   :  { %v1799_v37 = vadd.f32 %v1798_v1, %v1770_v47 }
 0x5d9   :  { %v1828_v11 = vadd.f32 %v1827_v20, %v1799_v37 }
 0x5db   :  { %v3477_v59 = vadd.f32 %v1828_v11, %v3401_v28 }
 0x5dc   :  { %v1772_v42 = vpop.f32.mrf.mxu3 }
 0x5dd   :  { %v1773_v41 = vadd.f32 %v1772_v42, %v3471_v58  ;;  %v1830_v49 = vpop.f32.mrf.mxu1  ;;  %1855 = vadd.xlane.f32.xlu1 %v3477_v59 }
 0x5de   :  { %v1803_v54 = vpop.f32.mrf.mxu0 }
 0x5df   :  { %v1802_v22 = vadd.f32 %v1801_v9, %v1773_v41  ;;  %v2037_v9 = vld [vmem:[%s3629_s1] sm:$0xff] }
 0x5e1   :  { %v1831_v23 = vadd.f32 %v1830_v49, %v1802_v22 }
 0x5e3   :  { %v3482_v12 = vadd.f32 %v1831_v23, %v3410_v53 }
 0x5e4   :  { %v1774_v25 = vpop.f32.mrf.mxu3 }
 0x5e5   :  { %v1775_v28 = vadd.f32 %v1774_v25, %v3471_v58  ;;  %v1832_v32 = vpop.f32.mrf.mxu1  ;;  %1857 = vadd.xlane.f32.xlu2 %v3482_v12 }
 0x5e6   :  { %v1806_v14 = vpop.f32.mrf.mxu0 }
 0x5e7   :  { %v1804_v7 = vadd.f32 %v1803_v54, %v1775_v28 }
 0x5e9   :  { %v1833_v60 = vadd.f32 %v1832_v32, %v1804_v7 }
 0x5eb   :  { %v1848_v24 = vadd.f32 %v1833_v60, %v3413_v36  ;;  %v2043_v60 = vld [vmem:[%s3629_s1 + $0x30] sm:$0xff] }
 0x5ec   :  { %v1777_v6 = vpop.f32.mrf.mxu3 }
 0x5ed   :  { %v1778_v57 = vadd.f32 %v1777_v6, %v3471_v58  ;;  %1859 = vadd.xlane.f32.xlu0 %v1848_v24  ;;  %v1835_v27 = vpop.f32.mrf.mxu1 }
 0x5ee   :  { %v1808_v51 = vpop.f32.mrf.mxu0 }
 0x5ef   :  { %v1807_v48 = vadd.f32 %v1806_v14, %v1778_v57 }
 0x5f1   :  { %v1836_v62 = vadd.f32 %v1835_v27, %v1807_v48 }
 0x5f3   :  { %v1849_v53 = vadd.f32 %v1836_v62, %v3422_v56 }
 0x5f4   :  { %v1779_v30 = vpop.f32.mrf.mxu3 }
 0x5f5   :  { %v1780_v16 = vadd.f32 %v1779_v30, %v3471_v58  ;;  %1861 = vadd.xlane.f32.xlu1 %v1849_v53  ;;  %v1837_v43 = vpop.f32.mrf.mxu1 }
 0x5f7   :  { %v1809_v15 = vadd.f32 %v1808_v51, %v1780_v16  ;;  %v2040_v51 = vld [vmem:[%s3629_s1 + $0x18] sm:$0xff] }
 0x5f9   :  { %v1838_v31 = vadd.f32 %v1837_v43, %v1809_v15  ;;  %v2039_v15 = vld [vmem:[%s3629_s1 + $0x10] sm:$0xff]  ;;  %v2042_v43 = vld [vmem:[%s3629_s1 + $0x28] sm:$0xff] }
 0x5fb   :  { %v1850_v36 = vadd.f32 %v1838_v31, %v3425_v4 }
 0x5fd   :  { %1863 = vadd.xlane.f32.xlu2 %v1850_v36 }
 0x615   :  { %2052 = vperm.xlu2 %2634, %v2038_v19  }
 0x63e   :  { %v1811_v21 = vpop.f32.mrf.mxu0 }
 0x644   :  { %v1782_v61 = vpop.f32.mrf.mxu3 }
 0x645   :  { %v1783_v56 = vadd.f32 %v1782_v61, %v3471_v58  ;;  %v1840_v63 = vpop.f32.mrf.mxu1 }
 0x646   :  { %v1813_v29 = vpop.f32.mrf.mxu0 }
 0x647   :  { %v1812_v26 = vadd.f32 %v1811_v21, %v1783_v56 }
 0x648   :  { %v1854_v34 = vpop.xlane.xlu0 %1853 }
 0x649   :  { %v1841_v38 = vadd.f32 %v1840_v63, %v1812_v26  ;;  %v1869_v2 = vmul.f32 0.015151516, %v1854_v34 }
 0x64b   :  { %v1851_v39 = vadd.f32 %v1841_v38, %v3434_v0  ;;  %v1877_v8 = vsub.f32 %v1845_v52, %v1869_v2 }
 0x64c   :  { %v1784_v40 = vpop.f32.mrf.mxu3 }
 0x64d   :  { %v1785_v4 = vadd.f32 %v1784_v40, %v3471_v58  ;;  %1865 = vadd.xlane.f32.xlu0 %v1851_v39  ;;  %v3498_v13 = vmul.f32 %v3337_v50, %v1877_v8  ;;  %v1842_v18 = vpop.f32.mrf.mxu1 }
 0x64f   :  { %v1814_v45 = vadd.f32 %v1813_v29, %v1785_v4  ;;  %v1893_v10 = vmul.f32 %v3498_v13, %v3498_v13 }
 0x650   :  { %v1856_v46 = vpop.xlane.xlu1 %1855 }
 0x651   :  { %v1843_v5 = vadd.f32 %v1842_v18, %v1814_v45  ;;  %v1870_v17 = vmul.f32 0.015151516, %v1856_v46  ;;  %1901 = vadd.xlane.f32.xlu2 %v1893_v10 }
 0x653   :  { %v1852_v0 = vadd.f32 %v1843_v5, %v3437_v55  ;;  %v1878_v1 = vsub.f32 %v3477_v59, %v1870_v17 }
 0x655   :  { %1867 = vadd.xlane.f32.xlu1 %v1852_v0  ;;  %v3505_v58 = vmul.f32 %v3337_v50, %v1878_v1 }
 0x657   :  { %v1894_v33 = vmul.f32 %v3505_v58, %v3505_v58 }
 0x658   :  { %v1858_v41 = vpop.xlane.xlu2 %1857 }
 0x659   :  { %1903 = vadd.xlane.f32.xlu0 %v1894_v33  ;;  %v1871_v49 = vmul.f32 0.015151516, %v1858_v41 }
 0x65b   :  { %v1879_v3 = vsub.f32 %v3482_v12, %v1871_v49  ;;  %v2041_v12 = vld [vmem:[%s3629_s1 + $0x20] sm:$0xff] }
 0x65d   :  { %v3524_v54 = vmul.f32 %v3337_v50, %v1879_v3 }
 0x65f   :  { %v1895_v28 = vmul.f32 %v3524_v54, %v3524_v54 }
 0x660   :  { %v1860_v35 = vpop.xlane.xlu0 %1859 }
 0x661   :  { %v1872_v52 = vmul.f32 0.015151516, %v1860_v35 }
 0x663   :  { %v1880_v44 = vsub.f32 %v1848_v24, %v1872_v52 }
 0x665   :  { %v3510_v47 = vmul.f32 %v3337_v50, %v1880_v44 }
 0x667   :  { %v1896_v20 = vmul.f32 %v3510_v47, %v3510_v47 }
 0x668   :  { %v1862_v55 = vpop.xlane.xlu1 %1861 }
 0x669   :  { %v1873_v37 = vmul.f32 0.015151516, %v1862_v55  ;;  %1907 = vadd.xlane.f32.xlu2 %v1896_v20 }
 0x66b   :  { %v1881_v11 = vsub.f32 %v1849_v53, %v1873_v37 }
 0x66d   :  { %v3518_v59 = vmul.f32 %v3337_v50, %v1881_v11 }
 0x66e   :  { %2047 = vperm.xlu1 %2633, %v2037_v9  }
 0x66f   :  { %v1897_v42 = vmul.f32 %v3518_v59, %v3518_v59 }
 0x670   :  { %v1864_v22 = vpop.xlane.xlu2 %1863 }
 0x671   :  { %1909 = vadd.xlane.f32.xlu0 %v1897_v42  ;;  %v1874_v23 = vmul.f32 0.015151516, %v1864_v22 }
 0x673   :  { %v1882_v25 = vsub.f32 %v1850_v36, %v1874_v23 }
 0x675   :  { %v3529_v32 = vmul.f32 %v3337_v50, %v1882_v25 }
 0x677   :  { %v1898_v7 = vmul.f32 %v3529_v32, %v3529_v32 }
 0x678   :  { %v3561_v31 = vpop.permute.xlu2 %2052 }
 0x698   :  { %1905 = vadd.xlane.f32.xlu1 %v1895_v28 }
 0x6a0   :  { %1911 = vadd.xlane.f32.xlu1 %v1898_v7 }
 0x6b9   :  { %2067 = vperm.xlu1 %2633, %v2041_v12  }
 0x6c0   :  { %v1866_v24 = vpop.xlane.xlu0 %1865 }
 0x6c1   :  { %v1875_v14 = vmul.f32 0.015151516, %v1866_v24  ;;  %2077 = vperm.xlu1 %2633, %v2043_v60  }
 0x6c3   :  { %v1883_v6 = vsub.f32 %v1851_v39, %v1875_v14 }
 0x6c4   :  { %v1902_v19 = vpop.xlane.xlu2 %1901 }
 0x6c5   :  { %v3540_v57 = vmul.f32 %v3337_v50, %v1883_v6  ;;  %v1917_v63 = vmul.f32 0.015151516, %v1902_v19  ;;  %v3583_v19 = vld [vmem:[#allocation11 + $0x6] ss:$0 sm:$0xff] }
 0x6c7   :  { %v1899_v27 = vmul.f32 %v3540_v57, %v3540_v57  ;;  %v1925_v34 = vadd.f32 1e-05, %v1917_v63 }
 0x6c8   :  { %v1868_v48 = vpop.xlane.xlu1 %1867 }
 0x6c9   :  { %v1876_v62 = vmul.f32 0.015151516, %v1868_v48  ;;  %1913 = vadd.xlane.f32.xlu2 %v1899_v27  ;;  %vm1939_vm15 = vweird.f32 %v1925_v34 }
 0x6cb   :  { %v1884_v53 = vsub.f32 %v1852_v0, %v1876_v62 }
 0x6cc   :  { %v1904_v21 = vpop.xlane.xlu0 %1903 }
 0x6cd   :  { %v3545_v30 = vmul.f32 %v3337_v50, %v1884_v53  ;;  %v2044_v50 = vld [vmem:[%s3629_s1 + $0x38] sm:$0xff]  ;;  %v1918_v56 = vmul.f32 0.015151516, %v1904_v21  ;;  %s2925_s1 = smov [#allocation13]  }
 0x6ce   :  { %s2178_s29 = sshll.u32 %s2925_s1, 4  ;;  %s2179_s29 = int_to_ptr.vmem [resolvable:$true] %s2178_s29 }
 0x6cf   :  { %v1900_v16 = vmul.f32 %v3545_v30, %v3545_v30  ;;  %v1926_v26 = vadd.f32 1e-05, %v1918_v56 }
 0x6d1   :  { %1915 = vadd.xlane.f32.xlu0 %v1900_v16  ;;  %2717 = vrsqrt.f32 %v1926_v26  ;;  %vm1949_vm14 = vweird.f32 %v1926_v26 }
 0x6d2   :  { %2719 = vrsqrt.f32 %v1925_v34 }
 0x6d7   :  { %v2718_v18 = vpop.eup %2717 }
 0x6d8   :  { %v2720_v10 = vpop.eup %2719  ;;  %v1944_v46 = vmul.f32 %v2718_v18, %v1926_v26  ;;  %vm1950_vm12 = vweird.f32 %v2718_v18 }
 0x6d9   :  { %v1934_v17 = vmul.f32 %v2720_v10, %v1925_v34  ;;  %vm1940_vm13 = vweird.f32 %v2720_v10  ;;  %vm1951_vm0 = vmor %vm1949_vm14, %vm1950_vm12 }
 0x6da   :  { %v1945_v33 = vmul.f32 %v2718_v18, %v1944_v46  ;;  %vm1941_vm1 = vmor %vm1939_vm15, %vm1940_vm13 }
 0x6db   :  { %v1935_v52 = vmul.f32 %v2720_v10, %v1934_v17 }
 0x6dc   :  { %v1908_v38 = vpop.xlane.xlu2 %1907  ;;  %v1946_v37 = vmul.f32 0.5, %v1945_v33 }
 0x6dd   :  { %v1920_v39 = vmul.f32 0.015151516, %v1908_v38  ;;  %v1936_v11 = vmul.f32 0.5, %v1935_v52 }
 0x6de   :  { %v1947_v49 = vsub.f32 1.5, %v1946_v37 }
 0x6df   :  { %v1928_v4 = vadd.f32 1e-05, %v1920_v39  ;;  %v1937_v22 = vsub.f32 1.5, %v1936_v11  ;;  %v3595_v39 = vld [vmem:[#allocation11 + $0x7] ss:$0 sm:$0xff] }
 0x6e0   :  { %v3563_v36 = vpop.permute.xlu1 %2047  ;;  %v1948_v28 = vmul.f32 %v2718_v18, %v1947_v49 }
 0x6e1   :  { %2062 = vperm.xlu2 %2634, %v2040_v51   ;;  %2721 = vrsqrt.f32 %v1928_v4  ;;  %v1938_v60 = vmul.f32 %v2720_v10, %v1937_v22  ;;  %vm1969_vm4 = vweird.f32 %v1928_v4 }
 0x6e2   :  { %v1952_v6 = vsel %vm1951_vm0, %v2718_v18, %v1948_v28 }
 0x6e3   :  { %v1942_v62 = vsel %vm1941_vm1, %v2720_v10, %v1938_v60  ;;  %v2014_v53 = vmul.f32 %v1952_v6, %v3505_v58 }
 0x6e4   :  { %v1910_v2 = vpop.xlane.xlu0 %1909 }
 0x6e5   :  { %2057 = vperm.xlu0 %2635, %v2039_v15   ;;  %v1921_v8 = vmul.f32 0.015151516, %v1910_v2  ;;  %v2013_v15 = vmul.f32 %v1942_v62, %v3498_v13  ;;  %v2022_v58 = vmul.f32 %v2014_v53, %v3583_v19 }
 0x6e7   :  { %v1929_v45 = vadd.f32 1e-05, %v1921_v8  ;;  %v2722_v1 = vpop.eup %2721  ;;  %v2021_v26 = vmul.f32 %v2013_v15, %v3583_v19 }
 0x6e8   :  { %v1964_v44 = vmul.f32 %v2722_v1, %v1928_v4  ;;  %vm1970_vm2 = vweird.f32 %v2722_v1 }
 0x6e9   :  { %2072 = vperm.xlu2 %2634, %v2042_v43   ;;  %2723 = vrsqrt.f32 %v1929_v45  ;;  %vm3585_vm5 = vmor %vm1969_vm4, %vm1970_vm2  ;;  %vm1979_vm6 = vweird.f32 %v1929_v45  ;;  %vm2157_vm4 = vcmask 1041409  }
 0x6ea   :  { %v1965_v42 = vmul.f32 %v2722_v1, %v1964_v44 }
 0x6ec   :  { %v1966_v23 = vmul.f32 0.5, %v1965_v42 }
 0x6ee   :  { %v1967_v24 = vsub.f32 1.5, %v1966_v23 }
 0x6ef   :  { %v2724_v35 = vpop.eup %2723 }
 0x6f0   :  { %v1974_v9 = vmul.f32 %v2724_v35, %v1929_v45  ;;  %v1968_v16 = vmul.f32 %v2722_v1, %v1967_v24  ;;  %vm1980_vm3 = vweird.f32 %v2724_v35  ;;  %v2029_v45 = vadd.f32 %v2021_v26, %v3595_v39 }
 0x6f1   :  { %2082 = vperm.xlu2 %2634, %v2044_v50   ;;  %vm1981_vm7 = vmor %vm1979_vm6, %vm1980_vm3  ;;  %vm2161_vm6 = vcmask 1043459  }
 0x6f2   :  { %v1975_v3 = vmul.f32 %v2724_v35, %v1974_v9  ;;  %v1972_v13 = vsel %vm3585_vm5, %v2722_v1, %v1968_v16  ;;  %vm2159_vm5 = vcmask 1042434  }
 0x6f3   :  { %v2016_v8 = vmul.f32 %v1972_v13, %v3510_v47 }
 0x6f4   :  { %v1976_v7 = vmul.f32 0.5, %v1975_v3 }
 0x6f5   :  { %v2024_v17 = vmul.f32 %v2016_v8, %v3583_v19 }
 0x6f6   :  { %v1977_v27 = vsub.f32 1.5, %v1976_v7 }
 0x6f7   :  { %v2032_v37 = vadd.f32 %v2024_v17, %v3595_v39 }
 0x6f8   :  { %v1978_v43 = vmul.f32 %v2724_v35, %v1977_v27 }
 0x6fa   :  { %v1982_v34 = vsel %vm1981_vm7, %v2724_v35, %v1978_v43  ;;  %v2085_v35 = vmul.f32 %v3563_v36, %v2029_v45  ;;  %vm2163_vm7 = vcmask 1044484  }
 0x6fb   :  { %v2017_v4 = vmul.f32 %v1982_v34, %v3518_v59 }
 0x6fc   :  { %v2093_v36 = vrot.slane %v2085_v35, 4 }
 0x6fd   :  { %v2025_v47 = vmul.f32 %v2017_v4, %v3583_v19 }
 0x6fe   :  { %v2094_v60 = vadd.f32 %v2093_v36, %v2085_v35 }
 0x6ff   :  { %v2033_v9 = vadd.f32 %v2025_v47, %v3595_v39 }
 0x70b   :  { %v1906_v61 = vpop.xlane.xlu1 %1905 }
 0x70c   :  { %v1919_v0 = vmul.f32 0.015151516, %v1906_v61 }
 0x70e   :  { %v3568_v20 = vadd.f32 1e-05, %v1919_v0 }
 0x710   :  { %vm1959_vm12 = vweird.f32 %v3568_v20 }
 0x713   :  { %v1912_v40 = vpop.xlane.xlu1 %1911 }
 0x714   :  { %v1922_v29 = vmul.f32 0.015151516, %v1912_v40  ;;  %v2030_v40 = vadd.f32 %v2022_v58, %v3595_v39 }
 0x716   :  { %v3565_v5 = vadd.f32 1e-05, %v1922_v29  ;;  %v2086_v1 = vmul.f32 %v3561_v31, %v2030_v40 }
 0x718   :  { %2725 = vrsqrt.f32 %v3565_v5  ;;  %vm1989_vm9 = vweird.f32 %v3565_v5  ;;  %v2099_v31 = vrot.slane %v2086_v1, 4 }
 0x719   :  { %2727 = vrsqrt.f32 %v3568_v20 }
 0x71a   :  { %v2100_v23 = vadd.f32 %v2099_v31, %v2086_v1 }
 0x71e   :  { %v3570_v55 = vpop.eup %2725 }
 0x71f   :  { %v1984_v41 = vmul.f32 %v3570_v55, %v3565_v5  ;;  %v3576_v12 = vpop.eup %2727  ;;  %vm1990_vm8 = vweird.f32 %v3570_v55 }
 0x720   :  { %v1954_v48 = vmul.f32 %v3576_v12, %v3568_v20  ;;  %vm1991_vm10 = vmor %vm1989_vm9, %vm1990_vm8  ;;  %vm1960_vm11 = vweird.f32 %v3576_v12  ;;  %vm2165_vm8 = vcmask 1045509   ;;  %vm2167_vm9 = vcmask 1046534  }
 0x721   :  { %v1985_v25 = vmul.f32 %v3570_v55, %v1984_v41  ;;  %vm1961_vm13 = vmor %vm1959_vm12, %vm1960_vm11 }
 0x722   :  { %v1955_v50 = vmul.f32 %v3576_v12, %v1954_v48 }
 0x723   :  { %v1986_v14 = vmul.f32 0.5, %v1985_v25 }
 0x724   :  { %v1956_v38 = vmul.f32 0.5, %v1955_v50 }
 0x725   :  { %v1987_v51 = vsub.f32 1.5, %v1986_v14 }
 0x726   :  { %v1957_v18 = vsub.f32 1.5, %v1956_v38 }
 0x727   :  { %v1988_v63 = vmul.f32 %v3570_v55, %v1987_v51  ;;  %v2095_v51 = vrot.slane %v2094_v60, 2 }
 0x728   :  { %v1958_v59 = vmul.f32 %v3576_v12, %v1957_v18 }
 0x729   :  { %v1992_v29 = vsel %vm1991_vm10, %v3570_v55, %v1988_v63  ;;  %v2096_v13 = vadd.f32 %v2095_v51, %v2094_v60  ;;  %vm2169_vm10 = vcmask 1047559  }
 0x72a   :  { %v2018_v5 = vmul.f32 %v1992_v29, %v3529_v32  ;;  %v1962_v41 = vsel %vm1961_vm13, %v3576_v12, %v1958_v59  ;;  %v2101_v12 = vrot.slane %v2100_v23, 2 }
 0x72b   :  { %v2068_v55 = vpop.permute.xlu1 %2067  ;;  %v2015_v28 = vmul.f32 %v1962_v41, %v3524_v54  ;;  %v2097_v1 = vrot.slane %v2096_v13, 1 }
 0x72c   :  { %v2026_v32 = vmul.f32 %v2018_v5, %v3583_v19  ;;  %v2089_v49 = vmul.f32 %v2068_v55, %v2033_v9 }
 0x72d   :  { %v2023_v16 = vmul.f32 %v2015_v28, %v3583_v19  ;;  %v2098_v9 = vadd.f32 %v2097_v1, %v2096_v13 }
 0x72e   :  { %v2034_v20 = vadd.f32 %v2026_v32, %v3595_v39  ;;  %v2117_v6 = vrot.slane %v2089_v49, 4 }
 0x72f   :  { %v2031_v63 = vadd.f32 %v2023_v16, %v3595_v39 }
 0x730   :  { %v2118_v54 = vadd.f32 %v2117_v6, %v2089_v49 }
 0x732   :  { %v2119_v8 = vrot.slane %v2118_v54, 2 }
 0x733   :  { %v2078_v40 = vpop.permute.xlu1 %2077 }
 0x734   :  { %v2120_v47 = vadd.f32 %v2119_v8, %v2118_v54 }
 0x73c   :  { %v1914_v21 = vpop.xlane.xlu2 %1913 }
 0x73d   :  { %v1923_v56 = vmul.f32 0.015151516, %v1914_v21 }
 0x73f   :  { %v1931_v2 = vadd.f32 1e-05, %v1923_v56  ;;  %v2102_v56 = vadd.f32 %v2101_v12, %v2100_v23  ;;  %v2141_v23 = vmul.f32 0.14285715, %v2098_v9 }
 0x741   :  { %2729 = vrsqrt.f32 %v1931_v2  ;;  %vm1999_vm15 = vweird.f32 %v1931_v2  ;;  %v2103_v45 = vrot.slane %v2102_v56, 1 }
 0x744   :  { %v2063_v10 = vpop.permute.xlu2 %2062  ;;  %v1916_v46 = vpop.xlane.xlu0 %1915 }
 0x745   :  { %v1924_v0 = vmul.f32 0.015151516, %v1916_v46  ;;  %v2088_v42 = vmul.f32 %v2063_v10, %v2032_v37 }
 0x747   :  { %v2730_v33 = vpop.eup %2729  ;;  %v1932_v52 = vadd.f32 1e-05, %v1924_v0  ;;  %v2111_v24 = vrot.slane %v2088_v42, 4 }
 0x748   :  { %v1994_v44 = vmul.f32 %v2730_v33, %v1931_v2  ;;  %vm2000_vm14 = vweird.f32 %v2730_v33 }
 0x749   :  { %2731 = vrsqrt.f32 %v1932_v52  ;;  %vm2001_vm0 = vmor %vm1999_vm15, %vm2000_vm14  ;;  %v2112_v43 = vadd.f32 %v2111_v24, %v2088_v42  ;;  %vm2009_vm2 = vweird.f32 %v1932_v52 }
 0x74a   :  { %v1995_v11 = vmul.f32 %v2730_v33, %v1994_v44  ;;  %v2104_v44 = vadd.f32 %v2103_v45, %v2102_v56 }
 0x74b   :  { %v2113_v38 = vrot.slane %v2112_v43, 2 }
 0x74c   :  { %v1996_v3 = vmul.f32 0.5, %v1995_v11  ;;  %v2073_v22 = vpop.permute.xlu2 %2072  ;;  %v2121_v11 = vrot.slane %v2120_v47, 1 }
 0x74d   :  { %v2090_v14 = vmul.f32 %v2073_v22, %v2034_v20  ;;  %v2114_v46 = vadd.f32 %v2113_v38, %v2112_v43 }
 0x74e   :  { %v1997_v25 = vsub.f32 1.5, %v1996_v3 }
 0x74f   :  { %v2732_v7 = vpop.eup %2731  ;;  %v2123_v50 = vrot.slane %v2090_v14, 4 }
 0x750   :  { %v1998_v27 = vmul.f32 %v2730_v33, %v1997_v25  ;;  %v2004_v48 = vmul.f32 %v2732_v7, %v1932_v52  ;;  %vm2010_vm1 = vweird.f32 %v2732_v7  ;;  %v2115_v52 = vrot.slane %v2114_v46, 1 }
 0x751   :  { %v2124_v34 = vadd.f32 %v2123_v50, %v2090_v14  ;;  %vm2011_vm3 = vmor %vm2009_vm2, %vm2010_vm1  ;;  %v2122_v25 = vadd.f32 %v2121_v11, %v2120_v47 }
 0x752   :  { %v2002_v62 = vsel %vm2001_vm0, %v2730_v33, %v1998_v27  ;;  %v2005_v53 = vmul.f32 %v2732_v7, %v2004_v48  ;;  %v2116_v22 = vadd.f32 %v2115_v52, %v2114_v46 }
 0x753   :  { %v2019_v15 = vmul.f32 %v2002_v62, %v3540_v57  ;;  %v2125_v17 = vrot.slane %v2124_v34, 2  ;;  %v2145_v48 = vmul.f32 0.14285715, %v2122_v25 }
 0x754   :  { %v2006_v21 = vmul.f32 0.5, %v2005_v53  ;;  %v2083_v36 = vpop.permute.xlu2 %2082  ;;  %v2144_v14 = vmul.f32 0.14285715, %v2116_v22 }
 0x755   :  { %v2027_v61 = vmul.f32 %v2019_v15, %v3583_v19  ;;  %v2126_v37 = vadd.f32 %v2125_v17, %v2124_v34 }
 0x756   :  { %v2007_v58 = vsub.f32 1.5, %v2006_v21 }
 0x757   :  { %v2035_v26 = vadd.f32 %v2027_v61, %v3595_v39  ;;  %v2058_v2 = vpop.permute.xlu0 %2057  ;;  %v2127_v20 = vrot.slane %v2126_v37, 1 }
 0x758   :  { %v2008_v57 = vmul.f32 %v2732_v7, %v2007_v58  ;;  %v2087_v4 = vmul.f32 %v2058_v2, %v2031_v63 }
 0x759   :  { %v2091_v29 = vmul.f32 %v2078_v40, %v2035_v26  ;;  %v2128_v6 = vadd.f32 %v2127_v20, %v2126_v37 }
 0x75a   :  { %v2012_v18 = vsel %vm2011_vm3, %v2732_v7, %v2008_v57  ;;  %v2105_v10 = vrot.slane %v2087_v4, 4 }
 0x75b   :  { %v2020_v0 = vmul.f32 %v2012_v18, %v3545_v30  ;;  %v2129_v5 = vrot.slane %v2091_v29, 4  ;;  %v2142_v30 = vmul.f32 0.14285715, %v2104_v44  ;;  %v2146_v15 = vmul.f32 0.14285715, %v2128_v6 }
 0x75c   :  { %v2106_v33 = vadd.f32 %v2105_v10, %v2087_v4 }
 0x75d   :  { %v2028_v35 = vmul.f32 %v2020_v0, %v3583_v19  ;;  %v2130_v59 = vadd.f32 %v2129_v5, %v2091_v29  ;;  %v2158_v60 = vsel %vm2157_vm4, %v2142_v30, %v2141_v23 }
 0x75e   :  { %v2107_v55 = vrot.slane %v2106_v33, 2 }
 0x75f   :  { %v2036_v32 = vadd.f32 %v2028_v35, %v3595_v39  ;;  %v2131_v31 = vrot.slane %v2130_v59, 2 }
 0x760   :  { %v2108_v42 = vadd.f32 %v2107_v55, %v2106_v33 }
 0x761   :  { %v2092_v41 = vmul.f32 %v2083_v36, %v2036_v32  ;;  %v2132_v3 = vadd.f32 %v2131_v31, %v2130_v59 }
 0x762   :  { %v2109_v49 = vrot.slane %v2108_v42, 1 }
 0x763   :  { %v2135_v19 = vrot.slane %v2092_v41, 4  ;;  %v2133_v24 = vrot.slane %v2132_v3, 1 }
 0x764   :  { %v2110_v28 = vadd.f32 %v2109_v49, %v2108_v42 }
 0x765   :  { %v2136_v7 = vadd.f32 %v2135_v19, %v2092_v41  ;;  %v2134_v16 = vadd.f32 %v2133_v24, %v2132_v3 }
 0x766   :  { %v2143_v39 = vmul.f32 0.14285715, %v2110_v28 }
 0x767   :  { %v2137_v27 = vrot.slane %v2136_v7, 2  ;;  %v2147_v21 = vmul.f32 0.14285715, %v2134_v16 }
 0x768   :  { %v2160_v12 = vsel %vm2159_vm5, %v2143_v39, %v2158_v60 }
 0x769   :  { %v2138_v62 = vadd.f32 %v2137_v27, %v2136_v7  ;;  %v2162_v53 = vsel %vm2161_vm6, %v2144_v14, %v2160_v12 }
 0x76a   :  { %v2164_v51 = vsel %vm2163_vm7, %v2145_v48, %v2162_v53 }
 0x76b   :  { %v2139_v43 = vrot.slane %v2138_v62, 1  ;;  %v2166_v54 = vsel %vm2165_vm8, %v2146_v15, %v2164_v51 }
 0x76c   :  { %v2168_v56 = vsel %vm2167_vm9, %v2147_v21, %v2166_v54 }
 0x76d   :  { %v2140_v50 = vadd.f32 %v2139_v43, %v2138_v62 }
 0x76f   :  { %v2148_v61 = vmul.f32 0.14285715, %v2140_v50 }
 0x771   :  { %v2170_v58 = vsel %vm2169_vm10, %v2148_v61, %v2168_v56 }
 0x772   :  { %2172 = vst [vmem:[#allocation13] sm:$0xff] %v2170_v58 }
 0x773   :  { %2183 = dma.vmem_to_hbm [thread:$0]  %s2179_s29, 128, %s2181_s3, [#allocation4]  }
 0x774   :  { %2909 = dma.done.wait [#allocation4], 128  }
 0x775   :  { %2910 = vsyncadd [#allocation4], 4294967168 }
 0x776   :  { %2188 = vsyncpa [#allocation3], 1 }
 0x777   :  { %2189 = vsyncpa [#allocation6], 1 }
 0x778   :  { %2190 = vsyncpa [#allocation9], 1 }
 0x779   :  { %2191 = vsyncpa [#allocation12], 1 }
 0x77a   :  { %2192 = vsyncpa [#allocation4], 1 }

</bundles_post_ra>
